<compile_context>
chip_gen: v6e
topology: v6e:2x2x1
jax: 0.10.0
libtpu: 0.0.40
codegen_flags: <defaults>
</compile_context>

<pallas_src>
import functools
import math

import jax
import jax.numpy as jnp
import numpy as np
from jax.experimental import pallas as pl
from jax.experimental.pallas import tpu as pltpu


# ------------------------------ helpers ------------------------------------ #

def _round_up(x, m):
    return (x + m - 1) // m * m


def _pick_batch_tile(batch, embed_dim):
    # TB = 128 -> pooled out block minor dim is a full 128-lane store (no masking) and the
    # activation lane width TB*E is a multiple of 128.  Per-tile VMEM stays tiny.
    del batch, embed_dim
    return 128


def _pack_params(conv_ws, conv_bs, num_fields, cross_layer_sizes, split_half):
    """Host-side packing: pad rows to multiples of 8, fold the split_half h-offset into the
    weight columns, restack (C, F*Hin) -> (Cpad, Fpad*Rprev) and cast to bf16."""
    F = num_fields
    fpad = _round_up(F, 8)
    num_layers = len(cross_layer_sizes)
    w_pads, b_pads, cpads, keeps = [], [], [], []
    r_prev, h_off, hin = fpad, 0, F          # layer 0: h = x0 rows [0, F) of the Fpad block
    for i, c in enumerate(cross_layer_sizes):
        cpad = _round_up(c, 8)
        w3 = jnp.asarray(conv_ws[i], jnp.float32).reshape(c, F, hin)
        w_pad = jnp.zeros((cpad, fpad, r_prev), jnp.float32)
        w_pad = w_pad.at[:c, :F, h_off:h_off + hin].set(w3)
        w_pads.append(w_pad.reshape(cpad, fpad * r_prev).astype(jnp.bfloat16))
        b_pad = jnp.zeros((cpad, 1), jnp.float32)
        b_pad = b_pad.at[:c, 0].set(jnp.asarray(conv_bs[i], jnp.float32))
        b_pads.append(b_pad)
        if split_half and i != num_layers - 1:
            keep = c // 2
            h_off, hin = keep, c - keep      # next layer reads the SECOND half of y_i
        else:
            keep = c
            h_off, hin = 0, c                # next layer reads all of y_i
        cpads.append(cpad)
        keeps.append(keep)
        r_prev = cpad                        # kernel always feeds the full padded y_i
    return w_pads, b_pads, cpads, keeps


# ----------------------------- Pallas kernel ------------------------------- #

def _make_fused_cin_kernel(num_layers):
    def kernel(x_ref, *refs):
        w_refs = refs[:num_layers]
        b_refs = refs[num_layers:2 * num_layers]
        pool_ref = refs[2 * num_layers]      # (TBE, TB) bf16, 0/1 (resident)
        o_ref = refs[2 * num_layers + 1]     # (1, Ctot_pad, TB) f32
        s_ref = refs[2 * num_layers + 2]     # (Ctot_pad, TBE) f32 VMEM scratch

        x0 = x_ref[...]                      # (Fpad, TBE) f32
        fpad, tbe = x0.shape
        h = x0
        row_off = 0
        for i in range(num_layers):
            w = w_refs[i][...]               # (Cpad_i, Fpad*Rprev) bf16, packed host-side
            cpad = w.shape[0]
            r_prev = h.shape[0]              # multiple of 8 -> tile-aligned reshape below
            # Outer-product channels folded into the MXU K dimension.
            z = (x0[:, None, :] * h[None, :, :]).reshape(fpad * r_prev, tbe)
            y = jnp.dot(w, z.astype(jnp.bfloat16),
                        preferred_element_type=jnp.float32)        # (Cpad_i, TBE) f32
            y = jnp.maximum(y + b_refs[i][...], 0.0)
            s_ref[row_off:row_off + cpad, :] = y                   # aligned scratch store
            row_off += cpad
            # Feed the FULL padded y to the next layer; the split_half offset / padding is
            # handled by zero columns of the next layer's packed weight (no slicing here).
            h = y

        # One pooling matmul (sum over embed_dim via 0/1 matrix) + one unmasked store.
        pooled = jnp.dot(s_ref[...].astype(jnp.bfloat16), pool_ref[...],
                         preferred_element_type=jnp.float32)       # (Ctot_pad, TB)
        o_ref[0] = pooled

    return kernel


def cin_pooled(x, conv_ws, conv_bs, cross_layer_sizes, split_half=True):
    """Fused CIN: x (B, F, E) -> pooled fc features (B, sum_i keep_i), f32."""
    B, F, E = x.shape
    num_layers = len(cross_layer_sizes)
    if split_half:
        for c in cross_layer_sizes[:-1]:
            if c % 2 != 0:
                raise ValueError("split_half requires even cross_layer_sizes (except last)")

    fpad = _round_up(F, 8)
    tb = _pick_batch_tile(B, E)
    ntiles = pl.cdiv(B, tb)
    b_pad = ntiles * tb
    tbe = tb * E

    # Lane-dense activation layout: x_lane[f, b*E + e] = x[b, f, e]; rows padded to Fpad,
    # batch padded to a whole number of tiles (padded lanes are sliced off at the end).
    x_lane = jnp.transpose(x, (1, 0, 2)).reshape(F, B * E).astype(jnp.float32)
    x_lane = jnp.pad(x_lane, ((0, fpad - F), (0, (b_pad - B) * E)))

    w_pads, b_pads, cpads, keeps = _pack_params(
        conv_ws, conv_bs, F, cross_layer_sizes, split_half)
    ctot_pad = sum(cpads)
    row_offs = np.concatenate(([0], np.cumsum(cpads)[:-1])).astype(np.int32)
    kept_cols = np.concatenate(
        [ro + np.arange(k) for ro, k in zip(row_offs, keeps)]).astype(np.int32)

    # Host-precomputed 0/1 pooling matrix (exact in bf16): pool[n, t] = 1 iff n // E == t.
    pool = (jnp.arange(tbe, dtype=jnp.int32)[:, None] // E
            == jnp.arange(tb, dtype=jnp.int32)[None, :]).astype(jnp.bfloat16)

    kernel = _make_fused_cin_kernel(num_layers)

    in_specs = [pl.BlockSpec((fpad, tbe), lambda i: (0, i))]       # batch tile of x
    for w in w_pads:                                               # resident bf16 weights
        in_specs.append(pl.BlockSpec(w.shape, lambda i: (0, 0)))
    for b in b_pads:                                               # resident f32 biases
        in_specs.append(pl.BlockSpec(b.shape, lambda i: (0, 0)))
    in_specs.append(pl.BlockSpec((tbe, tb), lambda i: (0, 0)))     # resident pooling matrix

    pooled_tiles = pl.pallas_call(
        kernel,
        out_shape=jax.ShapeDtypeStruct((ntiles, ctot_pad, tb), jnp.float32),
        grid_spec=pltpu.PrefetchScalarGridSpec(
            num_scalar_prefetch=0,
            grid=(ntiles,),
            in_specs=in_specs,
            out_specs=pl.BlockSpec((1, ctot_pad, tb), lambda i: (i, 0, 0)),
            scratch_shapes=[pltpu.VMEM((ctot_pad, tbe), jnp.float32)]),
        compiler_params=pltpu.CompilerParams(
            dimension_semantics=("parallel",),
            vmem_limit_bytes=32 * 1024 * 1024),
    )(x_lane, *w_pads, *b_pads, pool)

    # (ntiles, Ctot_pad, tb) -> (B, Ctot_pad) -> select the kept (un-padded) channels.
    pooled = pooled_tiles.transpose(0, 2, 1).reshape(b_pad, ctot_pad)[:B]
    return pooled[:, kept_cols]


# ---------------------------- Module equivalent ---------------------------- #

def init_cin_params(key, input_dim, cross_layer_sizes, split_half=True,
                    dtype=jnp.float32):
    """Deterministic parameter init mirroring the module's __init__ shapes."""
    num_layers = len(cross_layer_sizes)
    params = {"conv_w": [], "conv_b": []}
    prev_dim, fc_input_dim = input_dim, 0
    for i in range(num_layers):
        c = cross_layer_sizes[i]
        in_ch = input_dim * prev_dim
        key, kw, kb = jax.random.split(key, 3)
        bound = 1.0 / np.sqrt(in_ch)  # Conv1d(kernel=1) default uniform bound
        params["conv_w"].append(
            jax.random.uniform(kw, (c, in_ch), dtype, -bound, bound))
        params["conv_b"].append(
            jax.random.uniform(kb, (c,), dtype, -bound, bound))
        if split_half and i != num_layers - 1:
            c //= 2
        prev_dim = c
        fc_input_dim += prev_dim
    key, kw, kb = jax.random.split(key, 3)
    bound = 1.0 / np.sqrt(fc_input_dim)
    params["fc_w"] = jax.random.uniform(kw, (1, fc_input_dim), dtype, -bound, bound)
    params["fc_b"] = jax.random.uniform(kb, (1,), dtype, -bound, bound)
    return params


def cin_forward(params, x, cross_layer_sizes, split_half=True):
    """Pallas-backed forward.  x: (B, num_fields, embed_dim) -> (B, 1)."""
    pooled = cin_pooled(x, params["conv_w"], params["conv_b"],
                        cross_layer_sizes, split_half)
    # Final Linear on (B, Ctot) is trivial compute -> plain XLA.
    return pooled @ params["fc_w"].T + params["fc_b"]


def cin_forward_ref(params, x, cross_layer_sizes, split_half=True):
    """Pure-JAX f32 reference (matches the PyTorch forward exactly)."""
    num_layers = len(cross_layer_sizes)
    xs = []
    x0, h = x[:, :, None, :], x                     # (B, F, 1, E), (B, F, E)
    for i in range(num_layers):
        z = x0 * h[:, None, :, :]                   # (B, F, Hin, E)
        B, F, Hin, E = z.shape
        z = z.reshape(B, F * Hin, E)
        y = jnp.einsum("oc,bce->boe", params["conv_w"][i], z) \
            + params["conv_b"][i][None, :, None]
        y = jnp.maximum(y, 0.0)
        if split_half and i != num_layers - 1:
            half = y.shape[1] // 2
            yi, h = y[:, :half, :], y[:, half:, :]
        else:
            yi, h = y, y
        xs.append(yi)
    pooled = jnp.sum(jnp.concatenate(xs, axis=1), axis=2)
    return pooled @ params["fc_w"].T + params["fc_b"]


# ----------------------------------- main ----------------------------------- #

if __name__ == "__main__":
    # Module-consistent shapes; batch=256 -> TB=128 gives 2 lane-dense grid tiles
    # (both v7x TensorCores get a full tile, pooled stores are unmasked 128-lane writes).
    batch, num_fields, embed_dim = 256, 4, 16
    cross_layer_sizes = (8, 6)
    split_half = True

    key = jax.random.PRNGKey(0)
    key, kx = jax.random.split(key)
    x = jax.random.normal(kx, (batch, num_fields, embed_dim), jnp.float32)

    params = init_cin_params(key, num_fields, cross_layer_sizes, split_half)

    fwd = jax.jit(functools.partial(
        cin_forward, cross_layer_sizes=cross_layer_sizes, split_half=split_half))
    out = jax.block_until_ready(fwd(params, x))

    ref = cin_forward_ref(params, x, cross_layer_sizes, split_half)
    # bf16 MXU operands (f32 accumulation) -> allow bf16-level input rounding error.
    np.testing.assert_allclose(np.asarray(out), np.asarray(ref),
                               rtol=2e-2, atol=2e-2)
    assert out.shape == (batch, 1)
    print("KERNEL_OK")
</pallas_src>

<mosaic_0001>
module attributes {stable_mosaic.version = 11 : i64} {
  func.func @kernel(%arg0: i32, %arg1: memref<8x2048xf32, #tpu.memory_space<vmem>>, %arg2: memref<8x64xbf16, #tpu.memory_space<vmem>>, %arg3: memref<8x64xbf16, #tpu.memory_space<vmem>>, %arg4: memref<8x1xf32, #tpu.memory_space<vmem>>, %arg5: memref<8x1xf32, #tpu.memory_space<vmem>>, %arg6: memref<2048x128xbf16, #tpu.memory_space<vmem>>, %arg7: memref<1x16x128xf32, #tpu.memory_space<vmem>>, %arg8: memref<16x2048xf32, #tpu.memory_space<vmem>>) attributes {dimension_semantics = [#tpu.dimension_semantics<parallel>], iteration_bounds = array<i64: 2>, scalar_prefetch = 0 : i64, scratch_operands = 1 : i64, tpu.core_type = #tpu.core_type<tc>, window_params = [{transform_indices = @transform_0, window_bounds = array<i64: 8, 2048>}, {pipeline_mode = #tpu.pipeline_mode<synchronous>, transform_indices = @transform_1, window_bounds = array<i64: 8, 64>}, {pipeline_mode = #tpu.pipeline_mode<synchronous>, transform_indices = @transform_2, window_bounds = array<i64: 8, 64>}, {pipeline_mode = #tpu.pipeline_mode<synchronous>, transform_indices = @transform_3, window_bounds = array<i64: 8, 1>}, {pipeline_mode = #tpu.pipeline_mode<synchronous>, transform_indices = @transform_4, window_bounds = array<i64: 8, 1>}, {pipeline_mode = #tpu.pipeline_mode<synchronous>, transform_indices = @transform_5, window_bounds = array<i64: 2048, 128>}, {transform_indices = @transform_6, window_bounds = array<i64: 1, 16, 128>}]} {
    %c0 = arith.constant 0 : index
    %c0_0 = arith.constant 0 : index
    %0 = vector.load %arg1[%c0, %c0_0] : memref<8x2048xf32, #tpu.memory_space<vmem>>, vector<8x2048xf32>
    %c0_1 = arith.constant 0 : index
    %c0_2 = arith.constant 0 : index
    %1 = vector.load %arg2[%c0_1, %c0_2] : memref<8x64xbf16, #tpu.memory_space<vmem>>, vector<8x64xbf16>
    %2 = vector.shape_cast %0 : vector<8x2048xf32> to vector<8x1x2048xf32>
    %3 = vector.shape_cast %0 : vector<8x2048xf32> to vector<1x8x2048xf32>
    %4 = vector.broadcast %2 : vector<8x1x2048xf32> to vector<8x8x2048xf32>
    %5 = vector.broadcast %3 : vector<1x8x2048xf32> to vector<8x8x2048xf32>
    %6 = arith.mulf %4, %5 : vector<8x8x2048xf32>
    %7 = vector.shape_cast %6 : vector<8x8x2048xf32> to vector<64x2048xf32>
    %8 = arith.truncf %7 : vector<64x2048xf32> to vector<64x2048xbf16>
    %cst = arith.constant dense<0.000000e+00> : vector<8x2048xf32>
    %9 = tpu.matmul %1, %8, %cst {dimension_numbers = #tpu.dot_dimension_numbers<[1], [0], [0], [1], [0, 0, 1, 1], [], []>} : vector<8x64xbf16>, vector<64x2048xbf16>, vector<8x2048xf32> -> vector<8x2048xf32>
    %c0_3 = arith.constant 0 : index
    %c0_4 = arith.constant 0 : index
    %10 = vector.load %arg4[%c0_3, %c0_4] : memref<8x1xf32, #tpu.memory_space<vmem>>, vector<8x1xf32>
    %11 = vector.broadcast %10 : vector<8x1xf32> to vector<8x2048xf32>
    %12 = arith.addf %9, %11 : vector<8x2048xf32>
    %cst_5 = arith.constant 0.000000e+00 : f32
    %13 = vector.broadcast %cst_5 : f32 to vector<8x2048xf32>
    %14 = arith.maximumf %12, %13 : vector<8x2048xf32>
    %c0_6 = arith.constant 0 : index
    %c0_7 = arith.constant 0 : index
    %15 = vector.load %arg8[%c0_6, %c0_7] : memref<16x2048xf32, #tpu.memory_space<vmem>>, vector<8x2048xf32>
    tpu.vector_store %arg8[%c0_6, %c0_7], %14 {strides = array<i32>} : memref<16x2048xf32, #tpu.memory_space<vmem>>, vector<8x2048xf32>,
    %c0_8 = arith.constant 0 : index
    %c0_9 = arith.constant 0 : index
    %16 = vector.load %arg3[%c0_8, %c0_9] : memref<8x64xbf16, #tpu.memory_space<vmem>>, vector<8x64xbf16>
    %17 = vector.shape_cast %0 : vector<8x2048xf32> to vector<8x1x2048xf32>
    %18 = vector.shape_cast %14 : vector<8x2048xf32> to vector<1x8x2048xf32>
    %19 = vector.broadcast %17 : vector<8x1x2048xf32> to vector<8x8x2048xf32>
    %20 = vector.broadcast %18 : vector<1x8x2048xf32> to vector<8x8x2048xf32>
    %21 = arith.mulf %19, %20 : vector<8x8x2048xf32>
    %22 = vector.shape_cast %21 : vector<8x8x2048xf32> to vector<64x2048xf32>
    %23 = arith.truncf %22 : vector<64x2048xf32> to vector<64x2048xbf16>
    %cst_10 = arith.constant dense<0.000000e+00> : vector<8x2048xf32>
    %24 = tpu.matmul %16, %23, %cst_10 {dimension_numbers = #tpu.dot_dimension_numbers<[1], [0], [0], [1], [0, 0, 1, 1], [], []>} : vector<8x64xbf16>, vector<64x2048xbf16>, vector<8x2048xf32> -> vector<8x2048xf32>
    %c0_11 = arith.constant 0 : index
    %c0_12 = arith.constant 0 : index
    %25 = vector.load %arg5[%c0_11, %c0_12] : memref<8x1xf32, #tpu.memory_space<vmem>>, vector<8x1xf32>
    %26 = vector.broadcast %25 : vector<8x1xf32> to vector<8x2048xf32>
    %27 = arith.addf %24, %26 : vector<8x2048xf32>
    %cst_13 = arith.constant 0.000000e+00 : f32
    %28 = vector.broadcast %cst_13 : f32 to vector<8x2048xf32>
    %29 = arith.maximumf %27, %28 : vector<8x2048xf32>
    %c8 = arith.constant 8 : index
    %c0_14 = arith.constant 0 : index
    %30 = vector.load %arg8[%c8, %c0_14] : memref<16x2048xf32, #tpu.memory_space<vmem>>, vector<8x2048xf32>
    tpu.vector_store %arg8[%c8, %c0_14], %29 {strides = array<i32>} : memref<16x2048xf32, #tpu.memory_space<vmem>>, vector<8x2048xf32>,
    %c0_15 = arith.constant 0 : index
    %c0_16 = arith.constant 0 : index
    %31 = vector.load %arg8[%c0_15, %c0_16] : memref<16x2048xf32, #tpu.memory_space<vmem>>, vector<16x2048xf32>
    %32 = arith.truncf %31 : vector<16x2048xf32> to vector<16x2048xbf16>
    %c0_17 = arith.constant 0 : index
    %c0_18 = arith.constant 0 : index
    %33 = vector.load %arg6[%c0_17, %c0_18] : memref<2048x128xbf16, #tpu.memory_space<vmem>>, vector<2048x128xbf16>
    %cst_19 = arith.constant dense<0.000000e+00> : vector<16x128xf32>
    %34 = tpu.matmul %32, %33, %cst_19 {dimension_numbers = #tpu.dot_dimension_numbers<[1], [0], [0], [1], [0, 0, 1, 1], [], []>} : vector<16x2048xbf16>, vector<2048x128xbf16>, vector<16x128xf32> -> vector<16x128xf32>
    %c0_20 = arith.constant 0 : index
    %c0_21 = arith.constant 0 : index
    %c0_22 = arith.constant 0 : index
    %35 = vector.load %arg7[%c0_20, %c0_21, %c0_22] : memref<1x16x128xf32, #tpu.memory_space<vmem>>, vector<1x16x128xf32>
    %36 = vector.shape_cast %35 : vector<1x16x128xf32> to vector<16x128xf32>
    %37 = vector.shape_cast %34 : vector<16x128xf32> to vector<1x16x128xf32>
    tpu.vector_store %arg7[%c0_20, %c0_21, %c0_22], %37 {strides = array<i32>} : memref<1x16x128xf32, #tpu.memory_space<vmem>>, vector<1x16x128xf32>,
    return
  }
  func.func @transform_0(%arg0: i32) -> (i32, i32) {
    %c0_i32 = arith.constant 0 : i32
    %c0_i32_0 = arith.constant 0 : i32
    return %c0_i32, %arg0 : i32, i32
  }
  func.func @transform_1(%arg0: i32) -> (i32, i32) {
    %c0_i32 = arith.constant 0 : i32
    %c0_i32_0 = arith.constant 0 : i32
    %c0_i32_1 = arith.constant 0 : i32
    return %c0_i32, %c0_i32_0 : i32, i32
  }
  func.func @transform_2(%arg0: i32) -> (i32, i32) {
    %c0_i32 = arith.constant 0 : i32
    %c0_i32_0 = arith.constant 0 : i32
    %c0_i32_1 = arith.constant 0 : i32
    return %c0_i32, %c0_i32_0 : i32, i32
  }
  func.func @transform_3(%arg0: i32) -> (i32, i32) {
    %c0_i32 = arith.constant 0 : i32
    %c0_i32_0 = arith.constant 0 : i32
    %c0_i32_1 = arith.constant 0 : i32
    return %c0_i32, %c0_i32_0 : i32, i32
  }
  func.func @transform_4(%arg0: i32) -> (i32, i32) {
    %c0_i32 = arith.constant 0 : i32
    %c0_i32_0 = arith.constant 0 : i32
    %c0_i32_1 = arith.constant 0 : i32
    return %c0_i32, %c0_i32_0 : i32, i32
  }
  func.func @transform_5(%arg0: i32) -> (i32, i32) {
    %c0_i32 = arith.constant 0 : i32
    %c0_i32_0 = arith.constant 0 : i32
    %c0_i32_1 = arith.constant 0 : i32
    return %c0_i32, %c0_i32_0 : i32, i32
  }
  func.func @transform_6(%arg0: i32) -> (i32, i32, i32) {
    %c0_i32 = arith.constant 0 : i32
    %c0_i32_0 = arith.constant 0 : i32
    %c0_i32_1 = arith.constant 0 : i32
    return %arg0, %c0_i32, %c0_i32_0 : i32, i32, i32
  }
}

</mosaic_0001>

<bundles_post_ra>
// kernel: cin_forward.1
= control target key start
LH: loop header
LB: loop body
LE: loop exit
PB: predicated region body
PF: predicated region fallthrough
CT: control target
= control target key end

     0   :  { %s4321_s21 = smov 0   ;;  %s6090_s0 = inlined_call_operand.vmem [shape: f32[8,4096], index: 0, kind: input, shape index: {}]   ;;  %s6091_s1 = inlined_call_operand.vmem [shape: bf16[8,64], index: 1, kind: input, shape index: {}]   ;;  %s6092_s2 = inlined_call_operand.vmem [shape: bf16[8,64], index: 2, kind: input, shape index: {}]   ;;  %s6093_s3 = inlined_call_operand.vmem [shape: f32[8,1], index: 3, kind: input, shape index: {}]   ;;  %s6094_s4 = inlined_call_operand.vmem [shape: f32[8,1], index: 4, kind: input, shape index: {}]   ;;  %s6095_s5 = inlined_call_operand.vmem [shape: bf16[2048,128], index: 5, kind: input, shape index: {}]   ;;  %s6096_s6 = inlined_call_operand.vmem [shape: f32[2,16,128], index: 6, kind: output, shape index: {}]  }
   0x1 LB: > { %s4327_s22 = sadd.s32 4294967295, %s4282_s21   ;;  %p3785_p0 = scmp.ge.s32.totalorder %s4282_s21, 1  ;;  %s4282_s21 = sphi %s4321_s21, %s16_s21  }
   0x2   : > { %p213_p1 = scmp.lt.s32.totalorder %s4282_s21, 3 }
   0x4   : > { %p214_p2 = pnand %p3785_p0, %p213_p1 }
   0x6   : > { %217 = sbr.rel (%p214_p2) target bundleno = 786 (0x312), region = 44 }
   0xb   : > { %s3786_s23 = sshll.u32 %s4327_s22, 4  ;;  %v299_v0 = vlaneseq  ;;  %v4284_v1 = vmov 1966171168   ;;  %v6097_v3 = vmov 0   ;;  %v1392_v4 = vld [vmem:[%s6093_s3] sm:$0xff]  ;;  %vm1398_vm0 = vcmask 523264  }
   0xc   : > { %p244_p3 = scmp.lt.s32.totalorder %s3786_s23, 31  ;;  %v297_v2 = vunpack.c.l.s4 %v4284_v1  ;;  %1434 = vmatprep.mubr.bf16.mxu0 %v6097_v3  ;;  %1475 = vmatprep.mubr.bf16.mxu1 %v6097_v3  ;;  %v1955_v7 = vld [vmem:[%s6094_s4] sm:$0xff]  ;;  %p249_p4 = scmp.lt.s32.totalorder %s4327_s22, 1 }
   0xd   : > { %v300_v5 = vshrl.u32 %v299_v0, 7  ;;  %4123 = vset.pattern.permute.xlu0 %v6097_v3 }
   0xe   : > { %s6361_s23 = smov (!%p244_p3, %s3786_s23), 31  ;;  %v298_v6 = vunpack.c.0.s8 %v297_v2  ;;  %1395 = vperm.xlu0 %4123, %v1392_v4   ;;  %s6363_s22 = smov (!%p249_p4, %s4327_s22), 1 }
   0xf   : > { %s3787_s28 = sshll.u32 %s6361_s23, 3  ;;  %v4341_v8 = vsub.s32 1, %v300_v5  ;;  %v4350_v10 = vsub.s32 3, %v300_v5  ;;  %v4352_v11 = vsub.s32 0, %v300_v5  ;;  %v4363_v15 = vsub.s32 2, %v300_v5 }
  0x10   : > { %s4346_s7 = scalar_lea.vmem %s6090_s0, %s3787_s28  ;;  %v4348_v9 = vsub.s32 %v298_v6, %v300_v5  ;;  %v4365_v16 = vsub.s32 5, %v300_v5  ;;  %v4367_v17 = vsub.s32 7, %v300_v5  ;;  %v4382_v23 = vsub.s32 4, %v300_v5  ;;  %s3936_s28 = sshll.u32 %s6363_s22, 4 }
  0x11   : > { %v4355_v12 = vld [vmem:[%s4346_s7] sm:$0xff]  ;;  %v4358_v13 = vld [vmem:[%s4346_s7 + $0x8] sm:$0xff]  ;;  %v4361_v14 = vld [vmem:[%s4346_s7 + $0x10] sm:$0xff]  ;;  %v4384_v24 = vsub.s32 6, %v300_v5 }
  0x12   : > { %1958 = vperm.xlu0 %4123, %v1955_v7   ;;  %v4370_v18 = vld [vmem:[%s4346_s7 + $0x18] sm:$0xff]  ;;  %v4373_v19 = vld [vmem:[%s4346_s7 + $0x20] sm:$0xff]  ;;  %v4376_v20 = vld [vmem:[%s4346_s7 + $0x28] sm:$0xff]  ;;  %v289_v21 = vcombine.high %v4355_v12, %v4358_v13  ;;  %v288_v22 = vcombine.low %v4355_v12, %v4358_v13 }
  0x13   : > { %v4387_v25 = vld [vmem:[%s4346_s7 + $0x30] sm:$0xff]  ;;  %v4390_v26 = vld [vmem:[%s4346_s7 + $0x38] sm:$0xff]  ;;  %v291_v27 = vcombine.high %v4361_v14, %v4370_v18  ;;  %v293_v28 = vcombine.high %v4373_v19, %v4376_v20  ;;  %v290_v29 = vcombine.low %v4361_v14, %v4370_v18  ;;  %v292_v30 = vcombine.low %v4373_v19, %v4376_v20  ;;  %v4401_v31 = vld [vmem:[%s4346_s7 + $0x40] sm:$0xff] }
  0x14   : > { %v295_v32 = vcombine.high %v4387_v25, %v4390_v26  ;;  %v309_v33 = vrot.slane %v289_v21, %v4348_v9  ;;  %v294_v34 = vcombine.low %v4387_v25, %v4390_v26  ;;  %v302_v35 = vrot.slane %v288_v22, %v4348_v9  ;;  %v4410_v36 = vld [vmem:[%s4346_s7 + $0x48] sm:$0xff]  ;;  %v4413_v37 = vld [vmem:[%s4346_s7 + $0x50] sm:$0xff]  ;;  %v4416_v38 = vld [vmem:[%s4346_s7 + $0x58] sm:$0xff] }
  0x15   : > { %v323_v39 = vrot.slane %v291_v27, %v4348_v9  ;;  %v337_v40 = vrot.slane %v293_v28, %v4348_v9  ;;  %v316_v41 = vrot.slane %v290_v29, %v4348_v9  ;;  %v330_v42 = vrot.slane %v292_v30, %v4348_v9  ;;  %v4425_v45 = vld [vmem:[%s4346_s7 + $0x60] sm:$0xff]  ;;  %v4428_v46 = vld [vmem:[%s4346_s7 + $0x68] sm:$0xff]  ;;  %v4431_v47 = vld [vmem:[%s4346_s7 + $0x70] sm:$0xff] }
  0x16   : > { %v351_v43 = vrot.slane %v295_v32, %v4348_v9  ;;  %v344_v44 = vrot.slane %v294_v34, %v4348_v9  ;;  %v4434_v48 = vld [vmem:[%s4346_s7 + $0x78] sm:$0xff]  ;;  %v425_v49 = vcombine.high %v4401_v31, %v4410_v36  ;;  %v427_v50 = vcombine.high %v4413_v37, %v4416_v38 }
  0x17   : > { %v354_v51 = vcombine.low %v309_v33, %v323_v39  ;;  %v355_v52 = vcombine.high %v309_v33, %v323_v39  ;;  %v352_v53 = vcombine.low %v302_v35, %v316_v41  ;;  %v353_v54 = vcombine.high %v302_v35, %v316_v41 }
  0x18   : > { %v358_v55 = vcombine.low %v337_v40, %v351_v43  ;;  %v359_v56 = vcombine.high %v337_v40, %v351_v43  ;;  %v356_v57 = vcombine.low %v330_v42, %v344_v44  ;;  %v357_v58 = vcombine.high %v330_v42, %v344_v44 }
  0x19   : > { %v373_v59 = vrot.slane %v354_v51, %v4348_v9  ;;  %v387_v60 = vrot.slane %v355_v52, %v4348_v9  ;;  %v366_v61 = vrot.slane %v352_v53, %v4348_v9  ;;  %v380_v62 = vrot.slane %v353_v54, %v4348_v9 }
  0x1a   : > { %v401_v63 = vrot.slane %v358_v55, %v4348_v9  ;;  %v415_v0 = vrot.slane %v359_v56, %v4348_v9  ;;  %v394_v1 = vrot.slane %v356_v57, %v4348_v9  ;;  %v408_v2 = vrot.slane %v357_v58, %v4348_v9 }
  0x1b   : > { %v4453_v6 = vrot.slane %v425_v49, %v4348_v9  ;;  %v4456_v7 = vrot.slane %v427_v50, %v4348_v9 }
  0x1c   : > { %v4458_v21 = vcombine.high %v373_v59, %v401_v63  ;;  %v4460_v22 = vcombine.high %v387_v60, %v415_v0  ;;  %v4462_v27 = vcombine.low %v373_v59, %v401_v63  ;;  %v4464_v28 = vcombine.low %v387_v60, %v415_v0 }
  0x1d   : > { %v4466_v29 = vcombine.high %v366_v61, %v394_v1  ;;  %v4468_v30 = vcombine.high %v380_v62, %v408_v2  ;;  %v4470_v32 = vcombine.low %v366_v61, %v394_v1  ;;  %v4472_v33 = vcombine.low %v380_v62, %v408_v2 }
  0x1e   : > { %v4476_v34 = vrot.slane %v4458_v21, %v4341_v8  ;;  %v4480_v35 = vrot.slane %v4460_v22, %v4341_v8  ;;  %v4484_v39 = vrot.slane %v4458_v21, %v4350_v10  ;;  %v4488_v40 = vrot.slane %v4460_v22, %v4350_v10 }
  0x1f   : > { %v4492_v41 = vrot.slane %v4458_v21, %v4352_v11  ;;  %v4496_v42 = vrot.slane %v4460_v22, %v4352_v11  ;;  %v4500_v43 = vrot.slane %v4458_v21, %v4363_v15  ;;  %v4504_v44 = vrot.slane %v4460_v22, %v4363_v15 }
  0x20   : > { %v1297_v49 = vmul.f32 %v4476_v34, %v4358_v13  ;;  %v1313_v50 = vmul.f32 %v4480_v35, %v4358_v13  ;;  %v1299_v51 = vmul.f32 %v4484_v39, %v4370_v18  ;;  %v1315_v52 = vmul.f32 %v4488_v40, %v4370_v18 }
  0x21   : > { %v1296_v53 = vmul.f32 %v4492_v41, %v4355_v12  ;;  %v1312_v54 = vmul.f32 %v4496_v42, %v4355_v12  ;;  %v1298_v55 = vmul.f32 %v4500_v43, %v4361_v14  ;;  %v1314_v56 = vmul.f32 %v4504_v44, %v4361_v14 }
  0x22   : > { %v1377_v57 = vpack.c.bf16 %v1313_v50, %v1297_v49  ;;  %v1379_v58 = vpack.c.bf16 %v1315_v52, %v1299_v51  ;;  %v4524_v59 = vrot.slane %v4462_v27, %v4341_v8  ;;  %v4528_v60 = vrot.slane %v4464_v28, %v4341_v8 }
  0x23   : > { %v1376_v61 = vpack.c.bf16 %v1312_v54, %v1296_v53  ;;  %v1378_v62 = vpack.c.bf16 %v1314_v56, %v1298_v55  ;;  %v4532_v63 = vrot.slane %v4462_v27, %v4350_v10  ;;  %v4536_v0 = vrot.slane %v4464_v28, %v4350_v10 }
  0x24   : > { %1410 = vmatprep.subr.bf16.mxu0 %v1377_v57  ;;  %1451 = vmatprep.subr.bf16.mxu1 %v1379_v58  ;;  %v1265_v1 = vmul.f32 %v4524_v59, %v4358_v13  ;;  %v1281_v2 = vmul.f32 %v4528_v60, %v4358_v13  ;;  %v4544_v49 = vrot.slane %v4462_v27, %v4352_v11 }
  0x25   : > { %6185 = vst [vmem:[#allocation3_spill] sm:$0xff] %v4536_v0  ;;  %1411 = vmatpush1.bf16.msra.mxu0 %v1376_v61  ;;  %1452 = vmatpush1.bf16.msra.mxu1 %v1378_v62  ;;  %v1267_v50 = vmul.f32 %v4532_v63, %v4370_v18  ;;  %v1283_v51 = vmul.f32 %v4536_v0, %v4370_v18 }
  0x26   : > { %v4552_v52 = vrot.slane %v4464_v28, %v4352_v11  ;;  %v1361_v53 = vpack.c.bf16 %v1281_v2, %v1265_v1  ;;  %v1264_v54 = vmul.f32 %v4544_v49, %v4355_v12  ;;  %v4558_v55 = vrot.slane %v4462_v27, %v4363_v15 }
  0x27   : > { %v4562_v56 = vrot.slane %v4464_v28, %v4363_v15  ;;  %v1363_v57 = vpack.c.bf16 %v1283_v51, %v1267_v50  ;;  %v4568_v61 = vrot.slane %v4466_v29, %v4341_v8  ;;  %v4572_v62 = vrot.slane %v4468_v30, %v4341_v8 }
  0x28   : > { %6186 = vst [vmem:[#allocation4_spill] sm:$0xff] %v4558_v55  ;;  %v1280_v58 = vmul.f32 %v4552_v52, %v4355_v12  ;;  %1412 = vmatprep.subr.bf16.mxu0 %v1361_v53  ;;  %v1266_v1 = vmul.f32 %v4558_v55, %v4361_v14  ;;  %v4580_v50 = vrot.slane %v4466_v29, %v4350_v10 }
  0x29   : > { %6187 = vst [vmem:[#allocation5_spill] sm:$0xff] %v4562_v56  ;;  %6188 = vst [vmem:[#allocation6_spill] sm:$0xff] %v4568_v61  ;;  %v1282_v2 = vmul.f32 %v4562_v56, %v4361_v14  ;;  %v4584_v51 = vrot.slane %v4468_v30, %v4350_v10  ;;  %1453 = vmatprep.subr.bf16.mxu1 %v1363_v57  ;;  %v1233_v4 = vmul.f32 %v4568_v61, %v4358_v13 }
  0x2a   : > { %6189 = vst [vmem:[#allocation7_spill] sm:$0xff] %v4572_v62  ;;  %6190 = vst [vmem:[#allocation8_spill] sm:$0xff] %v4580_v50  ;;  %v1360_v5 = vpack.c.bf16 %v1280_v58, %v1264_v54  ;;  %v1249_v53 = vmul.f32 %v4572_v62, %v4358_v13  ;;  %v4592_v3 = vrot.slane %v4466_v29, %v4352_v11 }
  0x2b   : > { %6191 = vst [vmem:[#allocation9_spill] sm:$0xff] %v4584_v51  ;;  %v1362_v56 = vpack.c.bf16 %v1282_v2, %v1266_v1  ;;  %v1235_v55 = vmul.f32 %v4580_v50, %v4370_v18  ;;  %v1251_v0 = vmul.f32 %v4584_v51, %v4370_v18  ;;  %v4600_v54 = vrot.slane %v4468_v30, %v4352_v11 }
  0x2c   : > { %6192 = vst [vmem:[#allocation10_spill] sm:$0xff] %v4592_v3  ;;  %1413 = vmatpush1.bf16.msra.mxu0 %v1360_v5  ;;  %v1345_v57 = vpack.c.bf16 %v1249_v53, %v1233_v4  ;;  %v1232_v58 = vmul.f32 %v4592_v3, %v4355_v12  ;;  %v4606_v62 = vrot.slane %v4466_v29, %v4363_v15 }
  0x2d   : > { %6193 = vst [vmem:[#allocation11_spill] sm:$0xff] %v4600_v54  ;;  %v4610_v1 = vrot.slane %v4468_v30, %v4363_v15  ;;  %1454 = vmatpush1.bf16.msra.mxu1 %v1362_v56  ;;  %v1347_v2 = vpack.c.bf16 %v1251_v0, %v1235_v55  ;;  %v1248_v51 = vmul.f32 %v4600_v54, %v4355_v12 }
  0x2e   : > { %6194 = vst [vmem:[#allocation12_spill] sm:$0xff] %v4606_v62  ;;  %v4616_v5 = vrot.slane %v4470_v32, %v4341_v8  ;;  %v4620_v4 = vrot.slane %v4472_v33, %v4341_v8  ;;  %1414 = vmatprep.subr.bf16.mxu0 %v1345_v57  ;;  %v1234_v53 = vmul.f32 %v4606_v62, %v4361_v14 }
  0x2f   : > { %6195 = vst [vmem:[#allocation13_spill] sm:$0xff] %v4610_v1  ;;  %v1250_v3 = vmul.f32 %v4610_v1, %v4361_v14  ;;  %v4628_v0 = vrot.slane %v4470_v32, %v4350_v10  ;;  %v4632_v55 = vrot.slane %v4472_v33, %v4350_v10  ;;  %1455 = vmatprep.subr.bf16.mxu1 %v1347_v2 }
  0x30   : > { %v1344_v56 = vpack.c.bf16 %v1248_v51, %v1232_v58  ;;  %v1201_v57 = vmul.f32 %v4616_v5, %v4358_v13  ;;  %v1217_v62 = vmul.f32 %v4620_v4, %v4358_v13  ;;  %v4640_v1 = vrot.slane %v4470_v32, %v4352_v11 }
  0x31   : > { %v1346_v54 = vpack.c.bf16 %v1250_v3, %v1234_v53  ;;  %v1203_v50 = vmul.f32 %v4628_v0, %v4370_v18  ;;  %v1219_v61 = vmul.f32 %v4632_v55, %v4370_v18  ;;  %v4648_v51 = vrot.slane %v4472_v33, %v4352_v11 }
  0x32   : > { %6196 = vst [vmem:[#allocation14_spill] sm:$0xff] %v4640_v1  ;;  %1415 = vmatpush1.bf16.msra.mxu0 %v1344_v56  ;;  %v1329_v58 = vpack.c.bf16 %v1217_v62, %v1201_v57  ;;  %v1200_v13 = vmul.f32 %v4640_v1, %v4355_v12  ;;  %v4654_v2 = vrot.slane %v4470_v32, %v4363_v15 }
  0x33   : > { %6197 = vst [vmem:[#allocation15_spill] sm:$0xff] %v4648_v51  ;;  %v4658_v3 = vrot.slane %v4472_v33, %v4363_v15  ;;  %1456 = vmatpush1.bf16.msra.mxu1 %v1346_v54  ;;  %v1331_v53 = vpack.c.bf16 %v1219_v61, %v1203_v50  ;;  %v1216_v18 = vmul.f32 %v4648_v51, %v4355_v12  ;;  %v4685_v54 = vld [vmem:[%s6091_s1] sm:$0xf] }
  0x34   : > { %6198 = vst [vmem:[#allocation16_spill] sm:$0xff] %v4654_v2  ;;  %v4664_v56 = vrot.slane %v4458_v21, %v4365_v16  ;;  %v4668_v62 = vrot.slane %v4460_v22, %v4365_v16  ;;  %1416 = vmatprep.subr.bf16.mxu0 %v1329_v58  ;;  %v1202_v57 = vmul.f32 %v4654_v2, %v4361_v14 }
  0x35   : > { %6199 = vst [vmem:[#allocation17_spill] sm:$0xff] %v4658_v3  ;;  %v1218_v1 = vmul.f32 %v4658_v3, %v4361_v14  ;;  %v4676_v61 = vrot.slane %v4458_v21, %v4367_v17  ;;  %v4680_v12 = vrot.slane %v4460_v22, %v4367_v17  ;;  %1457 = vmatprep.subr.bf16.mxu1 %v1331_v53 }
  0x36   : > { %6200 = vst [vmem:[#allocation18_spill] sm:$0xff] %v4664_v56  ;;  %6201 = vst [vmem:[#allocation19_spill] sm:$0xff] %v4668_v62  ;;  %v1328_v50 = vpack.c.bf16 %v1216_v18, %v1200_v13  ;;  %v1301_v58 = vmul.f32 %v4664_v56, %v4376_v20  ;;  %v1317_v14 = vmul.f32 %v4668_v62, %v4376_v20 }
  0x37   : > { %6202 = vst [vmem:[#allocation20_spill] sm:$0xff] %v4676_v61  ;;  %6203 = vst [vmem:[#allocation21_spill] sm:$0xff] %v4680_v12  ;;  %v4693_v3 = vrot.slane %v4458_v21, %v4382_v23  ;;  %v1330_v2 = vpack.c.bf16 %v1218_v1, %v1202_v57  ;;  %v1303_v53 = vmul.f32 %v4676_v61, %v4390_v26 }
  0x38   : > { %v1319_v13 = vmul.f32 %v4680_v12, %v4390_v26  ;;  %v4701_v18 = vrot.slane %v4460_v22, %v4382_v23  ;;  %1417 = vmatpush1.bf16.msra.mxu0 %v1328_v50  ;;  %v1381_v56 = vpack.c.bf16 %v1317_v14, %v1301_v58  ;;  %v4707_v51 = vrot.slane %v4458_v21, %v4384_v24 }
  0x39   : > { %v1300_v62 = vmul.f32 %v4693_v3, %v4373_v19  ;;  %v4711_v1 = vrot.slane %v4460_v22, %v4384_v24  ;;  %1458 = vmatpush1.bf16.msra.mxu1 %v1330_v2  ;;  %v4717_v50 = vrot.slane %v4462_v27, %v4365_v16  ;;  %v4721_v58 = vrot.slane %v4464_v28, %v4365_v16 }
  0x3a   : > { %6204 = vst [vmem:[#allocation22_spill] sm:$0xff] %v4707_v51  ;;  %v1383_v57 = vpack.c.bf16 %v1319_v13, %v1303_v53  ;;  %v1316_v12 = vmul.f32 %v4701_v18, %v4373_v19  ;;  %1492 = vmatprep.subr.bf16.mxu0 %v1381_v56  ;;  %v1302_v21 = vmul.f32 %v4707_v51, %v4387_v25 }
  0x3b   : > { %6205 = vst [vmem:[#allocation23_spill] sm:$0xff] %v4711_v1  ;;  %6206 = vst [vmem:[#allocation24_spill] sm:$0xff] %v4717_v50  ;;  %v1318_v22 = vmul.f32 %v4711_v1, %v4387_v25  ;;  %v4729_v2 = vrot.slane %v4462_v27, %v4367_v17  ;;  %v4733_v14 = vrot.slane %v4464_v28, %v4367_v17  ;;  %3790 = vmatmul.mubr.msk.bf16.vlgmr.msra.gmra.mxu0 %vm1398_vm0, %v4685_v54 }
  0x3c   : > { %6207 = vst [vmem:[#allocation25_spill] sm:$0xff] %v4721_v58  ;;  %1533 = vmatprep.subr.bf16.mxu1 %v1383_v57  ;;  %v1380_v53 = vpack.c.bf16 %v1316_v12, %v1300_v62  ;;  %v1269_v56 = vmul.f32 %v4717_v50, %v4376_v20  ;;  %v1285_v13 = vmul.f32 %v4721_v58, %v4376_v20 }
  0x3d   : > { %6208 = vst [vmem:[#allocation26_spill] sm:$0xff] %v4729_v2  ;;  %6209 = vst [vmem:[#allocation27_spill] sm:$0xff] %v4733_v14  ;;  %3791 = vmatmul.mubr.msk.bf16.vlgmr.msra.gmra.mxu1 %vm1398_vm0, %v4685_v54  ;;  %v1382_v61 = vpack.c.bf16 %v1318_v22, %v1302_v21  ;;  %v1271_v1 = vmul.f32 %v4729_v2, %v4390_v26  ;;  %v1287_v51 = vmul.f32 %v4733_v14, %v4390_v26 }
  0x3e   : > { %v4749_v57 = vrot.slane %v4462_v27, %v4382_v23  ;;  %1493 = vmatpush1.bf16.msra.mxu0 %v1380_v53  ;;  %v1365_v62 = vpack.c.bf16 %v1285_v13, %v1269_v56  ;;  %v4753_v12 = vrot.slane %v4464_v28, %v4382_v23  ;;  %v4757_v58 = vrot.slane %v4462_v27, %v4384_v24 }
  0x3f   : > { %v4761_v21 = vrot.slane %v4464_v28, %v4384_v24  ;;  %1534 = vmatpush1.bf16.msra.mxu1 %v1382_v61  ;;  %v1367_v22 = vpack.c.bf16 %v1287_v51, %v1271_v1  ;;  %v4767_v53 = vrot.slane %v4466_v29, %v4365_v16  ;;  %v4771_v56 = vrot.slane %v4468_v30, %v4365_v16 }
  0x40   : > { %6210 = vst [vmem:[#allocation28_spill] sm:$0xff] %v4749_v57  ;;  %6211 = vst [vmem:[#allocation29_spill] sm:$0xff] %v4753_v12  ;;  %v1268_v14 = vmul.f32 %v4749_v57, %v4373_v19  ;;  %1494 = vmatprep.subr.bf16.mxu0 %v1365_v62  ;;  %v1284_v27 = vmul.f32 %v4753_v12, %v4373_v19  ;;  %v1270_v28 = vmul.f32 %v4757_v58, %v4387_v25 }
  0x41   : > { %6212 = vst [vmem:[#allocation30_spill] sm:$0xff] %v4757_v58  ;;  %6213 = vst [vmem:[#allocation31_spill] sm:$0xff] %v4761_v21  ;;  %v1286_v51 = vmul.f32 %v4761_v21, %v4387_v25  ;;  %v4781_v61 = vrot.slane %v4466_v29, %v4367_v17  ;;  %1535 = vmatprep.subr.bf16.mxu1 %v1367_v22  ;;  %v1237_v1 = vmul.f32 %v4767_v53, %v4376_v20 }
  0x42   : > { %6214 = vst [vmem:[#allocation32_spill] sm:$0xff] %v4767_v53  ;;  %6215 = vst [vmem:[#allocation33_spill] sm:$0xff] %v4771_v56  ;;  %v1253_v13 = vmul.f32 %v4771_v56, %v4376_v20  ;;  %v4789_v62 = vrot.slane %v4468_v30, %v4367_v17  ;;  %v4793_v58 = vrot.slane %v4466_v29, %v4382_v23  ;;  %v6220_v53 = vmov 0  }
  0x43   : > { %6216 = vst [vmem:[#allocation34_spill] sm:$0xff] %v4781_v61  ;;  %v1364_v21 = vpack.c.bf16 %v1284_v27, %v1268_v14  ;;  %v1366_v12 = vpack.c.bf16 %v1286_v51, %v1270_v28  ;;  %v1239_v2 = vmul.f32 %v4781_v61, %v4390_v26  ;;  %v4799_v22 = vrot.slane %v4468_v30, %v4382_v23 }
  0x44   : > { %6217 = vst [vmem:[#allocation35_spill] sm:$0xff] %v4789_v62  ;;  %6218 = vst [vmem:[#allocation36_spill] sm:$0xff] %v4793_v58  ;;  %1516 = vmatprep.mubr.bf16.mxu0 %v6220_v53  ;;  %v1349_v56 = vpack.c.bf16 %v1253_v13, %v1237_v1  ;;  %v1255_v57 = vmul.f32 %v4789_v62, %v4390_v26  ;;  %v1236_v50 = vmul.f32 %v4793_v58, %v4373_v19 }
  0x45   : > { %6219 = vst [vmem:[#allocation37_spill] sm:$0xff] %v4799_v22  ;;  %v4808_v14 = vrot.slane %v4466_v29, %v4384_v24  ;;  %1557 = vmatprep.mubr.bf16.mxu1 %v6220_v53  ;;  %1495 = vmatpush1.bf16.msra.mxu0 %v1364_v21  ;;  %v1252_v27 = vmul.f32 %v4799_v22, %v4373_v19 }
  0x46   : > { %1536 = vmatpush1.bf16.msra.mxu1 %v1366_v12  ;;  %v4815_v28 = vrot.slane %v4468_v30, %v4384_v24  ;;  %v4819_v51 = vrot.slane %v4470_v32, %v4365_v16  ;;  %1496 = vmatprep.subr.bf16.mxu0 %v1349_v56  ;;  %v1351_v1 = vpack.c.bf16 %v1255_v57, %v1239_v2 }
  0x47   : > { %6221 = vst [vmem:[#allocation38_spill] sm:$0xff] %v4808_v14  ;;  %v1238_v29 = vmul.f32 %v4808_v14, %v4387_v25  ;;  %v4825_v21 = vrot.slane %v4472_v33, %v4365_v16  ;;  %v4829_v12 = vrot.slane %v4470_v32, %v4367_v17  ;;  %v1348_v13 = vpack.c.bf16 %v1252_v27, %v1236_v50 }
  0x48   : > { %6222 = vst [vmem:[#allocation39_spill] sm:$0xff] %v4815_v28  ;;  %6223 = vst [vmem:[#allocation40_spill] sm:$0xff] %v4819_v51  ;;  %v1254_v30 = vmul.f32 %v4815_v28, %v4387_v25  ;;  %v1205_v22 = vmul.f32 %v4819_v51, %v4376_v20  ;;  %v4837_v2 = vrot.slane %v4472_v33, %v4367_v17  ;;  %1537 = vmatprep.subr.bf16.mxu1 %v1351_v1 }
  0x49   : > { %6224 = vst [vmem:[#allocation41_spill] sm:$0xff] %v4825_v21  ;;  %6225 = vst [vmem:[#allocation42_spill] sm:$0xff] %v4829_v12  ;;  %v1221_v57 = vmul.f32 %v4825_v21, %v4376_v20  ;;  %v1207_v56 = vmul.f32 %v4829_v12, %v4390_v26  ;;  %v4845_v50 = vrot.slane %v4470_v32, %v4382_v23  ;;  %1497 = vmatpush1.bf16.msra.mxu0 %v1348_v13 }
  0x4a   : > { %6226 = vst [vmem:[#allocation43_spill] sm:$0xff] %v4837_v2  ;;  %v4849_v27 = vrot.slane %v4472_v33, %v4382_v23  ;;  %v1350_v51 = vpack.c.bf16 %v1254_v30, %v1238_v29  ;;  %v1223_v28 = vmul.f32 %v4837_v2, %v4390_v26  ;;  %v4855_v1 = vrot.slane %v4470_v32, %v4384_v24 }
  0x4b   : > { %6227 = vst [vmem:[#allocation44_spill] sm:$0xff] %v4845_v50  ;;  %v4859_v20 = vrot.slane %v4472_v33, %v4384_v24  ;;  %v1333_v12 = vpack.c.bf16 %v1221_v57, %v1205_v22  ;;  %v1204_v21 = vmul.f32 %v4845_v50, %v4373_v19  ;;  %v6231_v29 = vcombine.high %v4425_v45, %v4428_v46  ;;  %v4272_v50 = vld [vmem:[%s4346_s7 + $0x50] sm:$0xff] }
  0x4c   : > { %6228 = vst [vmem:[#allocation45_spill] sm:$0xff] %v4849_v27  ;;  %6229 = vst [vmem:[#allocation46_spill] sm:$0xff] %v4855_v1  ;;  %v1220_v14 = vmul.f32 %v4849_v27, %v4373_v19  ;;  %1538 = vmatpush1.bf16.msra.mxu1 %v1350_v51  ;;  %v1335_v13 = vpack.c.bf16 %v1223_v28, %v1207_v56  ;;  %v1206_v32 = vmul.f32 %v4855_v1, %v4387_v25 }
  0x4d   : > { %6230 = vst [vmem:[#allocation47_spill] sm:$0xff] %v4859_v20  ;;  %v473_v26 = vrot.slane %v6231_v29, %v4348_v9  ;;  %v1222_v33 = vmul.f32 %v4859_v20, %v4387_v25  ;;  %v6232_v22 = vcombine.high %v4431_v47, %v4434_v48  ;;  %1498 = vmatprep.subr.bf16.mxu0 %v1333_v12 }
  0x4e   : > { %v1332_v19 = vpack.c.bf16 %v1220_v14, %v1204_v21  ;;  %v490_v57 = vcombine.low %v4453_v6, %v4456_v7  ;;  %v491_v51 = vcombine.high %v4453_v6, %v4456_v7  ;;  %v424_v28 = vcombine.low %v4401_v31, %v4410_v36  ;;  %1539 = vmatprep.subr.bf16.mxu1 %v1335_v13 }
  0x4f   : > { %v487_v30 = vrot.slane %v6232_v22, %v4348_v9  ;;  %v1334_v56 = vpack.c.bf16 %v1222_v33, %v1206_v32  ;;  %v426_v20 = vcombine.low %v4413_v37, %v4416_v38  ;;  %v428_v21 = vcombine.low %v4425_v45, %v4428_v46 }
  0x50   : > { %1499 = vmatpush1.bf16.msra.mxu0 %v1332_v19  ;;  %v509_v12 = vrot.slane %v490_v57, %v4348_v9  ;;  %v523_v14 = vrot.slane %v491_v51, %v4348_v9  ;;  %v430_v6 = vcombine.low %v4431_v47, %v4434_v48 }
  0x51   : > { %v494_v29 = vcombine.low %v473_v26, %v487_v30  ;;  %v495_v25 = vcombine.high %v473_v26, %v487_v30  ;;  %1540 = vmatpush1.bf16.msra.mxu1 %v1334_v56  ;;  %v438_v26 = vrot.slane %v424_v28, %v4348_v9  ;;  %v452_v32 = vrot.slane %v426_v20, %v4348_v9 }
  0x52   : > { %v466_v33 = vrot.slane %v428_v21, %v4348_v9  ;;  %v480_v22 = vrot.slane %v430_v6, %v4348_v9 }
  0x53   : > { %v537_v7 = vrot.slane %v494_v29, %v4348_v9  ;;  %v551_v13 = vrot.slane %v495_v25, %v4348_v9  ;;  %3792 = vmatmul.mubr.msk.bf16.vlgmr.msra.gmra.mxu0 %vm1398_vm0, %v4685_v54  ;;  %v488_v30 = vcombine.low %v438_v26, %v452_v32  ;;  %v489_v20 = vcombine.high %v438_v26, %v452_v32 }
  0x54   : > { %3793 = vmatmul.mubr.msk.bf16.vlgmr.msra.gmra.mxu1 %vm1398_vm0, %v4685_v54  ;;  %v492_v19 = vcombine.low %v466_v33, %v480_v22  ;;  %v493_v57 = vcombine.high %v466_v33, %v480_v22  ;;  %1598 = vmatprep.mubr.bf16.mxu0 %v6220_v53 }
  0x55   : > { %v4899_v45 = vcombine.high %v509_v12, %v537_v7  ;;  %v4901_v46 = vcombine.high %v523_v14, %v551_v13  ;;  %v4903_v47 = vcombine.low %v509_v12, %v537_v7  ;;  %v4905_v48 = vcombine.low %v523_v14, %v551_v13  ;;  %1639 = vmatprep.mubr.bf16.mxu1 %v6220_v53 }
  0x57   : > { %v4911_v51 = vrot.slane %v4899_v45, %v4341_v8  ;;  %v4915_v28 = vrot.slane %v4901_v46, %v4341_v8  ;;  %v4919_v56 = vrot.slane %v4899_v45, %v4350_v10  ;;  %v4923_v29 = vrot.slane %v4901_v46, %v4350_v10 }
  0x58   : > { %v4928_v25 = vrot.slane %v4899_v45, %v4352_v11  ;;  %v4932_v12 = vrot.slane %v4901_v46, %v4352_v11  ;;  %v4936_v14 = vrot.slane %v4899_v45, %v4363_v15  ;;  %v4940_v21 = vrot.slane %v4901_v46, %v4363_v15 }
  0x59   : > { %6233 = vst [vmem:[#allocation48_spill] sm:$0xff] %v4911_v51  ;;  %6234 = vst [vmem:[#allocation49_spill] sm:$0xff] %v4915_v28  ;;  %v1305_v6 = vmul.f32 %v4911_v51, %v4410_v36  ;;  %v1321_v7 = vmul.f32 %v4915_v28, %v4410_v36  ;;  %v1307_v13 = vmul.f32 %v4919_v56, %v4416_v38 }
  0x5a   : > { %6235 = vst [vmem:[#allocation50_spill] sm:$0xff] %v4919_v56  ;;  %6236 = vst [vmem:[#allocation51_spill] sm:$0xff] %v4923_v29  ;;  %v1323_v26 = vmul.f32 %v4923_v29, %v4416_v38  ;;  %v1304_v32 = vmul.f32 %v4928_v25, %v4401_v31  ;;  %v1320_v33 = vmul.f32 %v4932_v12, %v4401_v31 }
  0x5b   : > { %6237 = vst [vmem:[#allocation52_spill] sm:$0xff] %v4928_v25  ;;  %6238 = vst [vmem:[#allocation53_spill] sm:$0xff] %v4932_v12  ;;  %v1306_v22 = vmul.f32 %v4936_v14, %v4413_v37  ;;  %v1322_v51 = vmul.f32 %v4940_v21, %v4413_v37  ;;  %v1385_v1 = vpack.c.bf16 %v1321_v7, %v1305_v6 }
  0x5c   : > { %6239 = vst [vmem:[#allocation54_spill] sm:$0xff] %v4936_v14  ;;  %6240 = vst [vmem:[#allocation55_spill] sm:$0xff] %v4940_v21  ;;  %v1387_v28 = vpack.c.bf16 %v1323_v26, %v1307_v13  ;;  %v4961_v56 = vrot.slane %v4903_v47, %v4341_v8  ;;  %v4965_v29 = vrot.slane %v4905_v48, %v4341_v8 }
  0x5d   : > { %v1384_v25 = vpack.c.bf16 %v1320_v33, %v1304_v32  ;;  %v1386_v27 = vpack.c.bf16 %v1322_v51, %v1306_v22  ;;  %v4969_v12 = vrot.slane %v4903_v47, %v4350_v10  ;;  %v4973_v14 = vrot.slane %v4905_v48, %v4350_v10  ;;  %1574 = vmatprep.subr.bf16.mxu0 %v1385_v1 }
  0x5e   : > { %6241 = vst [vmem:[#allocation56_spill] sm:$0xff] %v4961_v56  ;;  %6242 = vst [vmem:[#allocation57_spill] sm:$0xff] %v4965_v29  ;;  %1615 = vmatprep.subr.bf16.mxu1 %v1387_v28  ;;  %v1273_v6 = vmul.f32 %v4961_v56, %v4410_v36  ;;  %v1289_v7 = vmul.f32 %v4965_v29, %v4410_v36  ;;  %v4981_v13 = vrot.slane %v4903_v47, %v4352_v11  ;;  %v4271_v29 = vld [vmem:[%s4346_s7 + $0x40] sm:$0xff] }
  0x5f   : > { %6243 = vst [vmem:[#allocation58_spill] sm:$0xff] %v4969_v12  ;;  %6244 = vst [vmem:[#allocation59_spill] sm:$0xff] %v4973_v14  ;;  %1575 = vmatpush1.bf16.msra.mxu0 %v1384_v25  ;;  %1616 = vmatpush1.bf16.msra.mxu1 %v1386_v27  ;;  %v1275_v51 = vmul.f32 %v4969_v12, %v4416_v38  ;;  %v1291_v26 = vmul.f32 %v4973_v14, %v4416_v38 }
  0x60   : > { %6245 = vst [vmem:[#allocation60_spill] sm:$0xff] %v4981_v13  ;;  %v4989_v1 = vrot.slane %v4905_v48, %v4352_v11  ;;  %v1369_v28 = vpack.c.bf16 %v1289_v7, %v1273_v6  ;;  %v1272_v36 = vmul.f32 %v4981_v13, %v4401_v31  ;;  %v4995_v32 = vrot.slane %v4903_v47, %v4363_v15 }
  0x61   : > { %v4999_v27 = vrot.slane %v4905_v48, %v4363_v15  ;;  %v1371_v25 = vpack.c.bf16 %v1291_v26, %v1275_v51  ;;  %v502_v33 = vrot.slane %v488_v30, %v4348_v9  ;;  %v516_v22 = vrot.slane %v489_v20, %v4348_v9 }
  0x62   : > { %6246 = vst [vmem:[#allocation61_spill] sm:$0xff] %v4989_v1  ;;  %6247 = vst [vmem:[#allocation62_spill] sm:$0xff] %v4995_v32  ;;  %v1288_v38 = vmul.f32 %v4989_v1, %v4401_v31  ;;  %1576 = vmatprep.subr.bf16.mxu0 %v1369_v28  ;;  %v1274_v6 = vmul.f32 %v4995_v32, %v4413_v37  ;;  %v530_v14 = vrot.slane %v492_v19, %v4348_v9  ;;  %v5032_v28 = vld [vmem:[%s4346_s7 + $0x68] sm:$0xff]  ;;  %v4270_v32 = vld [vmem:[%s4346_s7 + $0x58] sm:$0xff] }
  0x63   : > { %6248 = vst [vmem:[#allocation63_spill] sm:$0xff] %v4999_v27  ;;  %v1290_v7 = vmul.f32 %v4999_v27, %v4413_v37  ;;  %v544_v12 = vrot.slane %v493_v57, %v4348_v9  ;;  %1617 = vmatprep.subr.bf16.mxu1 %v1371_v25  ;;  %v5013_v31 = vrot.slane %v4899_v45, %v4365_v16 }
  0x64   : > { %v1368_v51 = vpack.c.bf16 %v1288_v38, %v1272_v36  ;;  %v5017_v30 = vrot.slane %v4901_v46, %v4365_v16  ;;  %v5021_v20 = vrot.slane %v4899_v45, %v4367_v17  ;;  %v5023_v37 = vcombine.high %v502_v33, %v530_v14 }
  0x65   : > { %6249 = vst [vmem:[#allocation64_spill] sm:$0xff] %v5013_v31  ;;  %v1370_v26 = vpack.c.bf16 %v1290_v7, %v1274_v6  ;;  %v5025_v19 = vcombine.high %v516_v22, %v544_v12  ;;  %v5027_v9 = vcombine.low %v502_v33, %v530_v14  ;;  %v5029_v57 = vcombine.low %v516_v22, %v544_v12 }
  0x66   : > { %6250 = vst [vmem:[#allocation65_spill] sm:$0xff] %v5017_v30  ;;  %6251 = vst [vmem:[#allocation66_spill] sm:$0xff] %v5021_v20  ;;  %1577 = vmatpush1.bf16.msra.mxu0 %v1368_v51  ;;  %v5036_v36 = vmul.f32 %v5032_v28, %v5013_v31  ;;  %v5040_v25 = vmul.f32 %v5032_v28, %v5017_v30  ;;  %v5044_v38 = vrot.slane %v4901_v46, %v4367_v17  ;;  %v4269_v30 = vld [vmem:[%s4346_s7 + $0x48] sm:$0xff] }
  0x67   : > { %1618 = vmatpush1.bf16.msra.mxu1 %v1370_v26  ;;  %v5048_v12 = vrot.slane %v5023_v37, %v4341_v8  ;;  %v5052_v14 = vrot.slane %v5025_v19, %v4341_v8  ;;  %v5056_v33 = vrot.slane %v5023_v37, %v4350_v10  ;;  %v5060_v22 = vrot.slane %v5025_v19, %v4350_v10 }
  0x68   : > { %6252 = vst [vmem:[#allocation67_spill] sm:$0xff] %v5044_v38  ;;  %v5064_v6 = vrot.slane %v5023_v37, %v4352_v11  ;;  %v5068_v7 = vrot.slane %v5025_v19, %v4352_v11  ;;  %v5072_v51 = vrot.slane %v5023_v37, %v4363_v15  ;;  %v5076_v26 = vrot.slane %v5025_v19, %v4363_v15 }
  0x69   : > { %6253 = vst [vmem:[#allocation68_spill] sm:$0xff] %v5048_v12  ;;  %6254 = vst [vmem:[#allocation69_spill] sm:$0xff] %v5052_v14  ;;  %v1241_v31 = vmul.f32 %v4269_v30, %v5048_v12  ;;  %v1257_v27 = vmul.f32 %v4269_v30, %v5052_v14  ;;  %v1243_v1 = vmul.f32 %v4270_v32, %v5056_v33 }
  0x6a   : > { %6255 = vst [vmem:[#allocation70_spill] sm:$0xff] %v5056_v33  ;;  %6256 = vst [vmem:[#allocation71_spill] sm:$0xff] %v5060_v22  ;;  %v1259_v13 = vmul.f32 %v4270_v32, %v5060_v22  ;;  %v1240_v56 = vmul.f32 %v4271_v29, %v5064_v6  ;;  %v1256_v21 = vmul.f32 %v4271_v29, %v5068_v7 }
  0x6b   : > { %6257 = vst [vmem:[#allocation72_spill] sm:$0xff] %v5068_v7  ;;  %6258 = vst [vmem:[#allocation73_spill] sm:$0xff] %v5072_v51  ;;  %v1242_v2 = vmul.f32 %v4272_v50, %v5072_v51  ;;  %v1258_v58 = vmul.f32 %v4272_v50, %v5076_v26  ;;  %v1353_v62 = vpack.c.bf16 %v1257_v27, %v1241_v31 }
  0x6c   : > { %v1355_v61 = vpack.c.bf16 %v1259_v13, %v1243_v1  ;;  %v5092_v14 = vrot.slane %v5027_v9, %v4341_v8  ;;  %v5096_v33 = vrot.slane %v5029_v57, %v4341_v8  ;;  %v1352_v22 = vpack.c.bf16 %v1256_v21, %v1240_v56 }
  0x6d   : > { %v1354_v12 = vpack.c.bf16 %v1258_v58, %v1242_v2  ;;  %v5100_v7 = vrot.slane %v5027_v9, %v4350_v10  ;;  %v5104_v51 = vrot.slane %v5029_v57, %v4350_v10  ;;  %1578 = vmatprep.subr.bf16.mxu0 %v1353_v62  ;;  %v5110_v8 = vrot.slane %v5027_v9, %v4352_v11 }
  0x6e   : > { %1619 = vmatprep.subr.bf16.mxu1 %v1355_v61  ;;  %v1209_v13 = vmul.f32 %v4269_v30, %v5092_v14  ;;  %v1225_v1 = vmul.f32 %v4269_v30, %v5096_v33  ;;  %1579 = vmatpush1.bf16.msra.mxu0 %v1352_v22  ;;  %v5116_v10 = vrot.slane %v5029_v57, %v4352_v11  ;;  %v5131_v11 = vld [vmem:[%s4346_s7 + $0x78] sm:$0xff] }
  0x6f   : > { %1620 = vmatpush1.bf16.msra.mxu1 %v1354_v12  ;;  %v1211_v58 = vmul.f32 %v4270_v32, %v5100_v7  ;;  %v1227_v2 = vmul.f32 %v4270_v32, %v5104_v51  ;;  %v1208_v62 = vmul.f32 %v4271_v29, %v5110_v8  ;;  %v5121_v56 = vrot.slane %v5027_v9, %v4363_v15 }
  0x70   : > { %v1337_v61 = vpack.c.bf16 %v1225_v1, %v1209_v13  ;;  %v5125_v21 = vrot.slane %v5029_v57, %v4363_v15  ;;  %v1224_v31 = vmul.f32 %v4271_v29, %v5116_v10  ;;  %v1389_v32 = vpack.c.bf16 %v5040_v25, %v5036_v36 }
  0x71   : > { %v1339_v27 = vpack.c.bf16 %v1227_v2, %v1211_v58  ;;  %v1311_v30 = vmul.f32 %v5131_v11, %v5021_v20  ;;  %v1210_v12 = vmul.f32 %v4272_v50, %v5121_v56  ;;  %v1327_v15 = vmul.f32 %v5131_v11, %v5044_v38  ;;  %v5156_v2 = vld [vmem:[%s4346_s7 + $0x60] sm:$0xff] }
  0x72   : > { %1580 = vmatprep.subr.bf16.mxu0 %v1337_v61  ;;  %v1226_v22 = vmul.f32 %v4272_v50, %v5125_v21  ;;  %v5141_v29 = vrot.slane %v4899_v45, %v4382_v23  ;;  %v1336_v36 = vpack.c.bf16 %v1224_v31, %v1208_v62  ;;  %v5145_v25 = vrot.slane %v4901_v46, %v4382_v23 }
  0x73   : > { %1621 = vmatprep.subr.bf16.mxu1 %v1339_v27  ;;  %v5149_v13 = vrot.slane %v4899_v45, %v4384_v24  ;;  %v5153_v50 = vrot.slane %v4901_v46, %v4384_v24  ;;  %v1391_v58 = vpack.c.bf16 %v1327_v15, %v1311_v30  ;;  %v5162_v62 = vrot.slane %v4903_v47, %v4365_v16  ;;  %v5167_v27 = vld [vmem:[%s4346_s7 + $0x70] sm:$0xff]  ;;  %s253_s7 = scalar_lea.vmem %s6096_s6, %s3936_s28 }
  0x74   : > { %v1338_v1 = vpack.c.bf16 %v1226_v22, %v1210_v12  ;;  %v1308_v61 = vmul.f32 %v5156_v2, %v5141_v29  ;;  %1581 = vmatpush1.bf16.msra.mxu0 %v1336_v36  ;;  %v1324_v45 = vmul.f32 %v5156_v2, %v5145_v25  ;;  %v5175_v30 = vrot.slane %v4905_v48, %v4365_v16 }
  0x75   : > { %6259 = vst [vmem:[#allocation74_spill] sm:$0xff] %v5162_v62  ;;  %v1310_v46 = vmul.f32 %v5167_v27, %v5149_v13  ;;  %v1326_v31 = vmul.f32 %v5167_v27, %v5153_v50  ;;  %1656 = vmatprep.subr.bf16.mxu0 %v1389_v32  ;;  %v1277_v12 = vmul.f32 %v5032_v28, %v5162_v62 }
  0x76   : > { %6260 = vst [vmem:[#allocation75_spill] sm:$0xff] %v5175_v30  ;;  %1622 = vmatpush1.bf16.msra.mxu1 %v1338_v1  ;;  %v5181_v22 = vrot.slane %v4903_v47, %v4367_v17  ;;  %v5185_v15 = vrot.slane %v4905_v48, %v4367_v17  ;;  %v1388_v36 = vpack.c.bf16 %v1324_v45, %v1308_v61 }
  0x77   : > { %1697 = vmatprep.subr.bf16.mxu1 %v1391_v58  ;;  %v1390_v38 = vpack.c.bf16 %v1326_v31, %v1310_v46  ;;  %v1293_v20 = vmul.f32 %v5032_v28, %v5175_v30  ;;  %v5191_v32 = vrot.slane %v4903_v47, %v4382_v23  ;;  %3794 = vmatmul.mubr.msk.bf16.vlgmr.msra.gmra.mxu0 %vm1398_vm0, %v4685_v54 }
  0x78   : > { %6261 = vst [vmem:[#allocation76_spill] sm:$0xff] %v5181_v22  ;;  %6262 = vst [vmem:[#allocation77_spill] sm:$0xff] %v5185_v15  ;;  %v1279_v1 = vmul.f32 %v5131_v11, %v5181_v22  ;;  %v1295_v62 = vmul.f32 %v5131_v11, %v5185_v15  ;;  %v5201_v58 = vrot.slane %v4905_v48, %v4382_v23  ;;  %1657 = vmatpush1.bf16.msra.mxu0 %v1388_v36 }
  0x79   : > { %v5205_v61 = vrot.slane %v4903_v47, %v4384_v24  ;;  %3795 = vmatmul.mubr.msk.bf16.vlgmr.msra.gmra.mxu1 %vm1398_vm0, %v4685_v54  ;;  %v1373_v45 = vpack.c.bf16 %v1293_v20, %v1277_v12  ;;  %v1276_v46 = vmul.f32 %v5156_v2, %v5191_v32  ;;  %v5213_v31 = vrot.slane %v4905_v48, %v4384_v24 }
  0x7a   : > { %6263 = vst [vmem:[#allocation78_spill] sm:$0xff] %v5201_v58  ;;  %1698 = vmatpush1.bf16.msra.mxu1 %v1390_v38  ;;  %v1375_v15 = vpack.c.bf16 %v1295_v62, %v1279_v1  ;;  %v1292_v22 = vmul.f32 %v5156_v2, %v5201_v58  ;;  %v5221_v30 = vrot.slane %v5023_v37, %v4365_v16 }
  0x7b   : > { %6264 = vst [vmem:[#allocation79_spill] sm:$0xff] %v5205_v61  ;;  %6265 = vst [vmem:[#allocation80_spill] sm:$0xff] %v5213_v31  ;;  %v1278_v47 = vmul.f32 %v5167_v27, %v5205_v61  ;;  %1658 = vmatprep.subr.bf16.mxu0 %v1373_v45  ;;  %v1294_v20 = vmul.f32 %v5167_v27, %v5213_v31  ;;  %v5227_v48 = vrot.slane %v5025_v19, %v4365_v16 }
  0x7c   : > { %v5231_v38 = vrot.slane %v5023_v37, %v4367_v17  ;;  %v5235_v62 = vrot.slane %v5025_v19, %v4367_v17  ;;  %1699 = vmatprep.subr.bf16.mxu1 %v1375_v15  ;;  %v1372_v12 = vpack.c.bf16 %v1292_v22, %v1276_v46  ;;  %v1245_v36 = vmul.f32 %v5032_v28, %v5221_v30 }
  0x7d   : > { %6266 = vst [vmem:[#allocation81_spill] sm:$0xff] %v5227_v48  ;;  %v5241_v1 = vrot.slane %v5023_v37, %v4382_v23  ;;  %v5245_v45 = vrot.slane %v5025_v19, %v4382_v23  ;;  %v1374_v31 = vpack.c.bf16 %v1294_v20, %v1278_v47  ;;  %v1261_v61 = vmul.f32 %v5032_v28, %v5227_v48 }
  0x7e   : > { %6267 = vst [vmem:[#allocation82_spill] sm:$0xff] %v5231_v38  ;;  %6268 = vst [vmem:[#allocation83_spill] sm:$0xff] %v5235_v62  ;;  %v1247_v58 = vmul.f32 %v5131_v11, %v5231_v38  ;;  %v1263_v22 = vmul.f32 %v5131_v11, %v5235_v62  ;;  %1680 = vmatprep.mubr.bf16.mxu0 %v6220_v53  ;;  %1659 = vmatpush1.bf16.msra.mxu0 %v1372_v12 }
  0x7f   : > { %6269 = vst [vmem:[#allocation84_spill] sm:$0xff] %v5241_v1  ;;  %6270 = vst [vmem:[#allocation85_spill] sm:$0xff] %v5245_v45  ;;  %v1244_v15 = vmul.f32 %v5156_v2, %v5241_v1  ;;  %v1260_v46 = vmul.f32 %v5156_v2, %v5245_v45  ;;  %v5260_v47 = vrot.slane %v5023_v37, %v4384_v24  ;;  %1700 = vmatpush1.bf16.msra.mxu1 %v1374_v31 }
  0x80   : > { %v5264_v20 = vrot.slane %v5025_v19, %v4384_v24  ;;  %v1357_v38 = vpack.c.bf16 %v1261_v61, %v1245_v36  ;;  %v1359_v62 = vpack.c.bf16 %v1263_v22, %v1247_v58  ;;  %v5268_v12 = vrot.slane %v5027_v9, %v4365_v16  ;;  %1721 = vmatprep.mubr.bf16.mxu1 %v6220_v53 }
  0x81   : > { %v5272_v1 = vrot.slane %v5029_v57, %v4365_v16  ;;  %v1356_v45 = vpack.c.bf16 %v1260_v46, %v1244_v15  ;;  %v1246_v37 = vmul.f32 %v5167_v27, %v5260_v47  ;;  %v5280_v19 = vrot.slane %v5027_v9, %v4367_v17 }
  0x82   : > { %v1262_v48 = vmul.f32 %v5167_v27, %v5264_v20  ;;  %1660 = vmatprep.subr.bf16.mxu0 %v1357_v38  ;;  %1701 = vmatprep.subr.bf16.mxu1 %v1359_v62  ;;  %v1213_v58 = vmul.f32 %v5032_v28, %v5268_v12  ;;  %v5289_v61 = vrot.slane %v5029_v57, %v4367_v17 }
  0x83   : > { %v1229_v16 = vmul.f32 %v5032_v28, %v5272_v1  ;;  %1661 = vmatpush1.bf16.msra.mxu0 %v1356_v45  ;;  %v1215_v36 = vmul.f32 %v5131_v11, %v5280_v19  ;;  %v5295_v22 = vrot.slane %v5027_v9, %v4382_v23  ;;  %v5299_v38 = vrot.slane %v5029_v57, %v4382_v23 }
  0x84   : > { %v1358_v31 = vpack.c.bf16 %v1262_v48, %v1246_v37  ;;  %v1231_v28 = vmul.f32 %v5131_v11, %v5289_v61  ;;  %v5305_v17 = vrot.slane %v5027_v9, %v4384_v24  ;;  %v5309_v48 = vrot.slane %v5029_v57, %v4384_v24 }
  0x85   : > { %v1341_v62 = vpack.c.bf16 %v1229_v16, %v1213_v58  ;;  %v1212_v45 = vmul.f32 %v5156_v2, %v5295_v22  ;;  %v1228_v23 = vmul.f32 %v5156_v2, %v5299_v38 }
  0x86   : > { %6271 = vst [vmem:[#allocation86_spill] sm:$0xff] %v5309_v48  ;;  %1702 = vmatpush1.bf16.msra.mxu1 %v1358_v31  ;;  %v1343_v15 = vpack.c.bf16 %v1231_v28, %v1215_v36  ;;  %v1214_v11 = vmul.f32 %v5167_v27, %v5305_v17  ;;  %v1230_v9 = vmul.f32 %v5167_v27, %v5309_v48  ;;  %v6275_v48 = vld [vmem:[#allocation6_spill] sm:$0xff] }
  0x87   : > { %1662 = vmatprep.subr.bf16.mxu0 %v1341_v62  ;;  %v1340_v46 = vpack.c.bf16 %v1228_v23, %v1212_v45 }
  0x88   : > { %1703 = vmatprep.subr.bf16.mxu1 %v1343_v15  ;;  %v1342_v37 = vpack.c.bf16 %v1230_v9, %v1214_v11 }
  0x89   : > { %1663 = vmatpush1.bf16.msra.mxu0 %v1340_v46  ;;  %v5325_v24 = vpop.permute.xlu0 %1395 }
  0x8a   : > { %1704 = vmatpush1.bf16.msra.mxu1 %v1342_v37 }
  0x8c   : > { %3796 = vmatmul.mubr.msk.bf16.vlgmr.msra.gmra.mxu0 %vm1398_vm0, %v4685_v54 }
  0x8d   : > { %3797 = vmatmul.mubr.msk.bf16.vlgmr.msra.gmra.mxu1 %vm1398_vm0, %v4685_v54  ;;  %1996 = vmatprep.mubr.bf16.mxu0 %v6220_v53 }
  0x8e   : > { %2037 = vmatprep.mubr.bf16.mxu1 %v6220_v53 }
  0xfb   : > { %v1436_v57 = vpop.f32.mrf.mxu0 }
  0xfc   : > { %v1437_v2 = vadd.f32 %v1436_v57, %v5325_v24 }
  0xfd   : > { %v1477_v27 = vpop.f32.mrf.mxu1  ;;  %v1438_v16 = vpop.f32.mrf.mxu0 }
  0xfe   : > { %v1478_v58 = vadd.f32 %v1477_v27, %v5325_v24  ;;  %v5329_v31 = vmax.f32 %v1437_v2, 0.0  ;;  %v1439_v36 = vadd.f32 %v1438_v16, %v5325_v24 }
  0xff   : > { %v1479_v62 = vpop.f32.mrf.mxu1  ;;  %v1440_v45 = vpop.f32.mrf.mxu0 }
 0x100   : > { %v5332_v28 = vmax.f32 %v1478_v58, 0.0  ;;  %v1480_v54 = vadd.f32 %v1479_v62, %v5325_v24  ;;  %v5335_v23 = vmax.f32 %v1439_v36, 0.0  ;;  %v1859_v11 = vmul.f32 %v5329_v31, %v4492_v41 }
 0x101   : > { %v1481_v15 = vpop.f32.mrf.mxu1  ;;  %v1441_v46 = vpop.f32.mrf.mxu0  ;;  %v1875_v37 = vmul.f32 %v5329_v31, %v4496_v42  ;;  %v1827_v36 = vmul.f32 %v5329_v31, %v4544_v49 }
 0x102   : > { %v5339_v9 = vmax.f32 %v1480_v54, 0.0  ;;  %v1861_v57 = vmul.f32 %v5332_v28, %v4500_v43  ;;  %v1877_v2 = vmul.f32 %v5332_v28, %v4504_v44  ;;  %v1860_v58 = vmul.f32 %v5335_v23, %v4476_v34  ;;  %v6272_v54 = vld [vmem:[#allocation3_spill] sm:$0xff] }
 0x103   : > { %v1482_v27 = vpop.f32.mrf.mxu1  ;;  %v1876_v16 = vmul.f32 %v5335_v23, %v4480_v35  ;;  %v1828_v41 = vmul.f32 %v5335_v23, %v4524_v59  ;;  %v1844_v44 = vmul.f32 %v5335_v23, %v4528_v60  ;;  %v1843_v34 = vmul.f32 %v5329_v31, %v4552_v52 }
 0x104   : > { %v1862_v42 = vmul.f32 %v5339_v9, %v4484_v39  ;;  %v1878_v43 = vmul.f32 %v5339_v9, %v4488_v40  ;;  %v1941_v35 = vpack.c.bf16 %v1877_v2, %v1861_v57  ;;  %v1830_v59 = vmul.f32 %v5339_v9, %v4532_v63  ;;  %v6273_v39 = vld [vmem:[#allocation4_spill] sm:$0xff]  ;;  %v6274_v40 = vld [vmem:[#allocation5_spill] sm:$0xff]  ;;  %v6276_v57 = vld [vmem:[#allocation7_spill] sm:$0xff] }
 0x105   : > { %v1940_v62 = vpack.c.bf16 %v1876_v16, %v1860_v58  ;;  %v1846_v49 = vmul.f32 %v5339_v9, %v6272_v54  ;;  %v1939_v15 = vpack.c.bf16 %v1875_v37, %v1859_v11  ;;  %v1829_v46 = vmul.f32 %v5332_v28, %v6273_v39  ;;  %v6277_v58 = vld [vmem:[#allocation8_spill] sm:$0xff]  ;;  %v6278_v37 = vld [vmem:[#allocation9_spill] sm:$0xff] }
 0x106   : > { %v1942_v45 = vpack.c.bf16 %v1878_v43, %v1862_v42  ;;  %v1845_v27 = vmul.f32 %v5332_v28, %v6274_v40  ;;  %v1924_v60 = vpack.c.bf16 %v1844_v44, %v1828_v41  ;;  %v1796_v52 = vmul.f32 %v5335_v23, %v6275_v48  ;;  %v6279_v44 = vld [vmem:[#allocation10_spill] sm:$0xff] }
 0x107   : > { %1972 = vmatprep.subr.bf16.mxu0 %v1940_v62  ;;  %v1812_v2 = vmul.f32 %v5335_v23, %v6276_v57  ;;  %v1926_v63 = vpack.c.bf16 %v1846_v49, %v1830_v59  ;;  %v1798_v11 = vmul.f32 %v5339_v9, %v6277_v58  ;;  %v1814_v16 = vmul.f32 %v5339_v9, %v6278_v37  ;;  %v6280_v62 = vld [vmem:[#allocation11_spill] sm:$0xff]  ;;  %v6282_v49 = vld [vmem:[#allocation13_spill] sm:$0xff] }
 0x108   : > { %2013 = vmatprep.subr.bf16.mxu1 %v1942_v45  ;;  %1973 = vmatpush1.bf16.msra.mxu0 %v1939_v15  ;;  %v1923_v42 = vpack.c.bf16 %v1843_v34, %v1827_v36  ;;  %v1925_v41 = vpack.c.bf16 %v1845_v27, %v1829_v46  ;;  %v1795_v48 = vmul.f32 %v5329_v31, %v6279_v44  ;;  %v6281_v45 = vld [vmem:[#allocation12_spill] sm:$0xff]  ;;  %v6283_v27 = vld [vmem:[#allocation14_spill] sm:$0xff]  ;;  %v6286_v58 = vld [vmem:[#allocation17_spill] sm:$0xff] }
 0x109   : > { %2014 = vmatpush1.bf16.msra.mxu1 %v1941_v35  ;;  %1974 = vmatprep.subr.bf16.mxu0 %v1924_v60  ;;  %v1908_v43 = vpack.c.bf16 %v1812_v2, %v1796_v52  ;;  %v1811_v54 = vmul.f32 %v5329_v31, %v6280_v62  ;;  %v1797_v59 = vmul.f32 %v5332_v28, %v6281_v45  ;;  %v6284_v52 = vld [vmem:[#allocation15_spill] sm:$0xff]  ;;  %v6285_v2 = vld [vmem:[#allocation16_spill] sm:$0xff] }
 0x10a   : > { %2015 = vmatprep.subr.bf16.mxu1 %v1926_v63  ;;  %v1813_v15 = vmul.f32 %v5332_v28, %v6282_v49  ;;  %v1764_v35 = vmul.f32 %v5335_v23, %v4616_v5  ;;  %v1780_v36 = vmul.f32 %v5335_v23, %v4620_v4  ;;  %v1910_v34 = vpack.c.bf16 %v1814_v16, %v1798_v11  ;;  %v5414_v49 = vld [vmem:[%s6092_s2] sm:$0xf] }
 0x10b   : > { %v1766_v39 = vmul.f32 %v5339_v9, %v4628_v0  ;;  %v1782_v46 = vmul.f32 %v5339_v9, %v4632_v55  ;;  %v1907_v40 = vpack.c.bf16 %v1811_v54, %v1795_v48  ;;  %v1763_v60 = vmul.f32 %v5329_v31, %v6283_v27 }
 0x10c   : > { %1975 = vmatpush1.bf16.msra.mxu0 %v1923_v42  ;;  %v1779_v5 = vmul.f32 %v5329_v31, %v6284_v52  ;;  %v1909_v57 = vpack.c.bf16 %v1813_v15, %v1797_v59  ;;  %v1892_v4 = vpack.c.bf16 %v1780_v36, %v1764_v35  ;;  %v1765_v63 = vmul.f32 %v5332_v28, %v6285_v2  ;;  %v6290_v52 = vld [vmem:[#allocation18_spill] sm:$0xff]  ;;  %v6292_v2 = vld [vmem:[#allocation23_spill] sm:$0xff] }
 0x10d   : > { %2016 = vmatpush1.bf16.msra.mxu1 %v1925_v41  ;;  %1976 = vmatprep.subr.bf16.mxu0 %v1908_v43  ;;  %v1781_v0 = vmul.f32 %v5332_v28, %v6286_v58  ;;  %v1894_v55 = vpack.c.bf16 %v1782_v46, %v1766_v39 }
 0x10e   : > { %2017 = vmatprep.subr.bf16.mxu1 %v1910_v34  ;;  %v1891_v43 = vpack.c.bf16 %v1779_v5, %v1763_v60 }
 0x10f   : > { %v1893_v54 = vpack.c.bf16 %v1781_v0, %v1765_v63  ;;  %v6294_v0 = vld [vmem:[#allocation20_spill] sm:$0xff] }
 0x110   : > { %1977 = vmatpush1.bf16.msra.mxu0 %v1907_v40  ;;  %v6289_v40 = vld [vmem:[#allocation22_spill] sm:$0xff] }
 0x111   : > { %2018 = vmatpush1.bf16.msra.mxu1 %v1909_v57  ;;  %1978 = vmatprep.subr.bf16.mxu0 %v1892_v4  ;;  %v6291_v57 = vld [vmem:[#allocation19_spill] sm:$0xff] }
 0x112   : > { %2019 = vmatprep.subr.bf16.mxu1 %v1894_v55  ;;  %v6295_v55 = vld [vmem:[#allocation21_spill] sm:$0xff] }
 0x113   : > { %v1518_v11 = vpop.f32.mrf.mxu0 }
 0x114   : > { %v1519_v37 = vadd.f32 %v1518_v11, %v5325_v24  ;;  %v1559_v16 = vpop.f32.mrf.mxu1  ;;  %1979 = vmatpush1.bf16.msra.mxu0 %v1891_v43 }
 0x115   : > { %v1560_v42 = vadd.f32 %v1559_v16, %v5325_v24  ;;  %v1520_v41 = vpop.f32.mrf.mxu0  ;;  %2020 = vmatpush1.bf16.msra.mxu1 %v1893_v54  ;;  %v6296_v16 = vld [vmem:[#allocation25_spill] sm:$0xff] }
 0x116   : > { %v5405_v44 = vmax.f32 %v1519_v37, 0.0  ;;  %v1521_v48 = vadd.f32 %v1520_v41, %v5325_v24  ;;  %v1561_v62 = vpop.f32.mrf.mxu1  ;;  %v6297_v41 = vld [vmem:[#allocation28_spill] sm:$0xff] }
 0x117   : > { %v5408_v45 = vmax.f32 %v1560_v42, 0.0  ;;  %v1562_v59 = vadd.f32 %v1561_v62, %v5325_v24  ;;  %v1522_v15 = vpop.f32.mrf.mxu0  ;;  %3798 = vmatmul.mubr.msk.bf16.vlgmr.msra.gmra.mxu0 %vm1398_vm0, %v5414_v49  ;;  %v6298_v62 = vld [vmem:[#allocation26_spill] sm:$0xff] }
 0x118   : > { %6287 = vst [vmem:[#allocation3_spill] sm:$0xff] %v5405_v44  ;;  %v5416_v35 = vmax.f32 %v1521_v48, 0.0  ;;  %v1563_v36 = vpop.f32.mrf.mxu1  ;;  %v1863_v39 = vmul.f32 %v5405_v44, %v4693_v3  ;;  %v1879_v46 = vmul.f32 %v5405_v44, %v4701_v18  ;;  %v6293_v3 = vld [vmem:[#allocation24_spill] sm:$0xff]  ;;  %3799 = vmatmul.mubr.msk.bf16.vlgmr.msra.gmra.mxu1 %vm1398_vm0, %v5414_v49  ;;  %v1831_v43 = vmul.f32 %v5405_v44, %v6297_v41 }
 0x119   : > { %6288 = vst [vmem:[#allocation4_spill] sm:$0xff] %v5408_v45  ;;  %v5418_v34 = vmax.f32 %v1562_v59, 0.0  ;;  %v1865_v27 = vmul.f32 %v5408_v45, %v6289_v40  ;;  %v1523_v60 = vpop.f32.mrf.mxu0  ;;  %v1881_v63 = vmul.f32 %v5408_v45, %v6292_v2  ;;  %v6299_v59 = vld [vmem:[#allocation27_spill] sm:$0xff]  ;;  %v6300_v36 = vld [vmem:[#allocation29_spill] sm:$0xff]  ;;  %2078 = vmatprep.mubr.bf16.mxu0 %v6220_v53  ;;  %2119 = vmatprep.mubr.bf16.mxu1 %v6220_v53 }
 0x11a   : > { %v1864_v5 = vmul.f32 %v5416_v35, %v6290_v52  ;;  %v1880_v4 = vmul.f32 %v5416_v35, %v6291_v57  ;;  %v1832_v58 = vmul.f32 %v5416_v35, %v6293_v3  ;;  %v1564_v18 = vpop.f32.mrf.mxu1  ;;  %v1848_v42 = vmul.f32 %v5416_v35, %v6296_v16  ;;  %v6301_v57 = vld [vmem:[#allocation30_spill] sm:$0xff]  ;;  %v6302_v3 = vld [vmem:[#allocation31_spill] sm:$0xff]  ;;  %v6304_v16 = vld [vmem:[#allocation33_spill] sm:$0xff] }
 0x11b   : > { %v1866_v11 = vmul.f32 %v5418_v34, %v6294_v0  ;;  %v1882_v37 = vmul.f32 %v5418_v34, %v6295_v55  ;;  %v1834_v54 = vmul.f32 %v5418_v34, %v6298_v62  ;;  %v1850_v15 = vmul.f32 %v5418_v34, %v6299_v59  ;;  %v6303_v0 = vld [vmem:[#allocation32_spill] sm:$0xff]  ;;  %v6308_v59 = vld [vmem:[#allocation37_spill] sm:$0xff] }
 0x11c   : > { %v1944_v48 = vpack.c.bf16 %v1880_v4, %v1864_v5  ;;  %v1847_v40 = vmul.f32 %v5405_v44, %v6300_v36  ;;  %v1943_v52 = vpack.c.bf16 %v1879_v46, %v1863_v39  ;;  %v1833_v2 = vmul.f32 %v5408_v45, %v6301_v57  ;;  %v6305_v46 = vld [vmem:[#allocation34_spill] sm:$0xff]  ;;  %v6311_v57 = vld [vmem:[#allocation40_spill] sm:$0xff] }
 0x11d   : > { %v1946_v60 = vpack.c.bf16 %v1882_v37, %v1866_v11  ;;  %v1849_v18 = vmul.f32 %v5408_v45, %v6302_v3  ;;  %v1945_v5 = vpack.c.bf16 %v1881_v63, %v1865_v27  ;;  %v1928_v4 = vpack.c.bf16 %v1848_v42, %v1832_v58  ;;  %v6306_v37 = vld [vmem:[#allocation35_spill] sm:$0xff]  ;;  %v6307_v58 = vld [vmem:[#allocation36_spill] sm:$0xff] }
 0x11e   : > { %2054 = vmatprep.subr.bf16.mxu0 %v1944_v48  ;;  %v1800_v55 = vmul.f32 %v5416_v35, %v6303_v0  ;;  %v1816_v41 = vmul.f32 %v5416_v35, %v6304_v16  ;;  %v1930_v39 = vpack.c.bf16 %v1850_v15, %v1834_v54  ;;  %v1802_v11 = vmul.f32 %v5418_v34, %v6305_v46  ;;  %v6310_v15 = vld [vmem:[#allocation39_spill] sm:$0xff]  ;;  %v6315_v16 = vld [vmem:[#allocation44_spill] sm:$0xff] }
 0x11f   : > { %2095 = vmatprep.subr.bf16.mxu1 %v1946_v60  ;;  %2055 = vmatpush1.bf16.msra.mxu0 %v1943_v52  ;;  %v1818_v62 = vmul.f32 %v5418_v34, %v6306_v37  ;;  %v1927_v48 = vpack.c.bf16 %v1847_v40, %v1831_v43  ;;  %v1929_v27 = vpack.c.bf16 %v1849_v18, %v1833_v2  ;;  %v6309_v60 = vld [vmem:[#allocation38_spill] sm:$0xff] }
 0x120   : > { %2096 = vmatpush1.bf16.msra.mxu1 %v1945_v5  ;;  %2056 = vmatprep.subr.bf16.mxu0 %v1928_v4  ;;  %v1912_v63 = vpack.c.bf16 %v1816_v41, %v1800_v55  ;;  %v1799_v42 = vmul.f32 %v5405_v44, %v6307_v58  ;;  %v1815_v36 = vmul.f32 %v5405_v44, %v6308_v59  ;;  %v6312_v5 = vld [vmem:[#allocation41_spill] sm:$0xff]  ;;  %v6313_v2 = vld [vmem:[#allocation42_spill] sm:$0xff]  ;;  %v6314_v4 = vld [vmem:[#allocation43_spill] sm:$0xff] }
 0x121   : > { %2097 = vmatprep.subr.bf16.mxu1 %v1930_v39  ;;  %v1801_v54 = vmul.f32 %v5408_v45, %v6309_v60  ;;  %v1817_v52 = vmul.f32 %v5408_v45, %v6310_v15  ;;  %v1768_v3 = vmul.f32 %v5416_v35, %v6311_v57  ;;  %v1784_v43 = vmul.f32 %v5416_v35, %v6312_v5  ;;  %v6316_v39 = vld [vmem:[#allocation45_spill] sm:$0xff] }
 0x122   : > { %v1914_v40 = vpack.c.bf16 %v1818_v62, %v1802_v11  ;;  %v1770_v18 = vmul.f32 %v5418_v34, %v6313_v2  ;;  %v1786_v0 = vmul.f32 %v5418_v34, %v6314_v4  ;;  %v1911_v55 = vpack.c.bf16 %v1815_v36, %v1799_v42  ;;  %v6318_v62 = vld [vmem:[#allocation47_spill] sm:$0xff] }
 0x123   : > { %2057 = vmatpush1.bf16.msra.mxu0 %v1927_v48  ;;  %v1767_v41 = vmul.f32 %v5405_v44, %v6315_v16  ;;  %v1783_v46 = vmul.f32 %v5405_v44, %v6316_v39  ;;  %v1913_v37 = vpack.c.bf16 %v1817_v52, %v1801_v54  ;;  %v1896_v58 = vpack.c.bf16 %v1784_v43, %v1768_v3  ;;  %v6317_v48 = vld [vmem:[#allocation46_spill] sm:$0xff]  ;;  %v6336_v44 = vld [vmem:[#allocation69_spill] sm:$0xff] }
 0x124   : > { %2098 = vmatpush1.bf16.msra.mxu1 %v1929_v27  ;;  %2058 = vmatprep.subr.bf16.mxu0 %v1912_v63  ;;  %v1769_v11 = vmul.f32 %v5408_v45, %v6317_v48  ;;  %v1785_v59 = vmul.f32 %v5408_v45, %v6318_v62  ;;  %v1898_v60 = vpack.c.bf16 %v1786_v0, %v1770_v18  ;;  %v6322_v48 = vld [vmem:[#allocation48_spill] sm:$0xff]  ;;  %v6323_v62 = vld [vmem:[#allocation49_spill] sm:$0xff]  ;;  %v6334_v45 = vld [vmem:[#allocation63_spill] sm:$0xff] }
 0x125   : > { %2099 = vmatprep.subr.bf16.mxu1 %v1914_v40  ;;  %v1895_v27 = vpack.c.bf16 %v1783_v46, %v1767_v41  ;;  %v6320_v41 = vld [vmem:[#allocation53_spill] sm:$0xff]  ;;  %v6321_v46 = vld [vmem:[#allocation54_spill] sm:$0xff] }
 0x126   : > { %v1897_v63 = vpack.c.bf16 %v1785_v59, %v1769_v11 }
 0x127   : > { %2059 = vmatpush1.bf16.msra.mxu0 %v1911_v55  ;;  %v6319_v55 = vld [vmem:[#allocation52_spill] sm:$0xff] }
 0x128   : > { %2100 = vmatpush1.bf16.msra.mxu1 %v1913_v37  ;;  %2060 = vmatprep.subr.bf16.mxu0 %v1896_v58 }
 0x129   : > { %2101 = vmatprep.subr.bf16.mxu1 %v1898_v60  ;;  %v6324_v60 = vld [vmem:[#allocation55_spill] sm:$0xff] }
 0x12b   : > { %2061 = vmatpush1.bf16.msra.mxu0 %v1895_v27 }
 0x12c   : > { %2102 = vmatpush1.bf16.msra.mxu1 %v1897_v63  ;;  %v6325_v63 = vld [vmem:[#allocation56_spill] sm:$0xff] }
 0x12e   : > { %3800 = vmatmul.mubr.msk.bf16.vlgmr.msra.gmra.mxu0 %vm1398_vm0, %v5414_v49 }
 0x12f   : > { %3801 = vmatmul.mubr.msk.bf16.vlgmr.msra.gmra.mxu1 %vm1398_vm0, %v5414_v49  ;;  %2160 = vmatprep.mubr.bf16.mxu0 %v6220_v53 }
 0x130   : > { %2201 = vmatprep.mubr.bf16.mxu1 %v6220_v53 }
 0x137   : > { %v1600_v42 = vpop.f32.mrf.mxu0 }
 0x138   : > { %v1601_v36 = vadd.f32 %v1600_v42, %v5325_v24 }
 0x139   : > { %v1641_v54 = vpop.f32.mrf.mxu1  ;;  %v1602_v52 = vpop.f32.mrf.mxu0 }
 0x13a   : > { %v1642_v15 = vadd.f32 %v1641_v54, %v5325_v24  ;;  %v5498_v57 = vmax.f32 %v1601_v36, 0.0  ;;  %v1603_v3 = vadd.f32 %v1602_v52, %v5325_v24  ;;  %v6326_v54 = vld [vmem:[#allocation50_spill] sm:$0xff]  ;;  %v6327_v52 = vld [vmem:[#allocation51_spill] sm:$0xff] }
 0x13b   : > { %v1643_v5 = vpop.f32.mrf.mxu1  ;;  %v1604_v2 = vpop.f32.mrf.mxu0 }
 0x13c   : > { %v5501_v43 = vmax.f32 %v1642_v15, 0.0  ;;  %v1644_v40 = vadd.f32 %v1643_v5, %v5325_v24  ;;  %v5504_v18 = vmax.f32 %v1603_v3, 0.0  ;;  %v1867_v16 = vmul.f32 %v5498_v57, %v6319_v55  ;;  %v6328_v5 = vld [vmem:[#allocation57_spill] sm:$0xff]  ;;  %v6329_v2 = vld [vmem:[#allocation60_spill] sm:$0xff] }
 0x13d   : > { %v1645_v4 = vpop.f32.mrf.mxu1  ;;  %v1883_v39 = vmul.f32 %v5498_v57, %v6320_v41  ;;  %v1605_v58 = vpop.f32.mrf.mxu0  ;;  %v6330_v41 = vld [vmem:[#allocation58_spill] sm:$0xff] }
 0x13e   : > { %v5506_v0 = vmax.f32 %v1644_v40, 0.0  ;;  %v1869_v37 = vmul.f32 %v5501_v43, %v6321_v46  ;;  %v1868_v11 = vmul.f32 %v5504_v18, %v6322_v48  ;;  %v1884_v59 = vmul.f32 %v5504_v18, %v6323_v62  ;;  %v6331_v58 = vld [vmem:[#allocation59_spill] sm:$0xff]  ;;  %v6332_v62 = vld [vmem:[#allocation61_spill] sm:$0xff] }
 0x13f   : > { %v1885_v27 = vmul.f32 %v5501_v43, %v6324_v60  ;;  %v1836_v42 = vmul.f32 %v5504_v18, %v6325_v63  ;;  %v1646_v36 = vpop.f32.mrf.mxu1  ;;  %v1852_v40 = vmul.f32 %v5504_v18, %v6328_v5  ;;  %v1835_v4 = vmul.f32 %v5498_v57, %v6329_v2 }
 0x140   : > { %v1870_v15 = vmul.f32 %v5506_v0, %v6326_v54  ;;  %v1886_v3 = vmul.f32 %v5506_v0, %v6327_v52  ;;  %v1948_v55 = vpack.c.bf16 %v1884_v59, %v1868_v11  ;;  %v1838_v46 = vmul.f32 %v5506_v0, %v6330_v41  ;;  %v6333_v54 = vld [vmem:[#allocation62_spill] sm:$0xff]  ;;  %v6335_v59 = vld [vmem:[#allocation68_spill] sm:$0xff] }
 0x141   : > { %v1854_v48 = vmul.f32 %v5506_v0, %v6331_v58  ;;  %v1851_v60 = vmul.f32 %v5498_v57, %v6332_v62  ;;  %v1947_v36 = vpack.c.bf16 %v1883_v39, %v1867_v16  ;;  %v1837_v52 = vmul.f32 %v5501_v43, %v6333_v54  ;;  %v6338_v39 = vld [vmem:[#allocation71_spill] sm:$0xff] }
 0x142   : > { %v1950_v63 = vpack.c.bf16 %v1886_v3, %v1870_v15  ;;  %v1853_v5 = vmul.f32 %v5501_v43, %v6334_v45  ;;  %2136 = vmatprep.subr.bf16.mxu0 %v1948_v55  ;;  %v1949_v2 = vpack.c.bf16 %v1885_v27, %v1869_v37  ;;  %v1932_v11 = vpack.c.bf16 %v1852_v40, %v1836_v42  ;;  %v6337_v15 = vld [vmem:[#allocation70_spill] sm:$0xff]  ;;  %v6339_v40 = vld [vmem:[#allocation72_spill] sm:$0xff]  ;;  %v6340_v55 = vld [vmem:[#allocation73_spill] sm:$0xff] }
 0x143   : > { %v1804_v41 = vmul.f32 %v5504_v18, %v6335_v59  ;;  %v1820_v58 = vmul.f32 %v5504_v18, %v6336_v44  ;;  %2137 = vmatpush1.bf16.msra.mxu0 %v1947_v36  ;;  %v1934_v62 = vpack.c.bf16 %v1854_v48, %v1838_v46  ;;  %v1806_v16 = vmul.f32 %v5506_v0, %v6337_v15 }
 0x144   : > { %2177 = vmatprep.subr.bf16.mxu1 %v1950_v63  ;;  %v1822_v3 = vmul.f32 %v5506_v0, %v6338_v39  ;;  %2138 = vmatprep.subr.bf16.mxu0 %v1932_v11  ;;  %v1931_v45 = vpack.c.bf16 %v1851_v60, %v1835_v4  ;;  %v1933_v37 = vpack.c.bf16 %v1853_v5, %v1837_v52 }
 0x145   : > { %2178 = vmatpush1.bf16.msra.mxu1 %v1949_v2  ;;  %v1916_v27 = vpack.c.bf16 %v1820_v58, %v1804_v41  ;;  %v1803_v42 = vmul.f32 %v5498_v57, %v5064_v6  ;;  %v1819_v44 = vmul.f32 %v5498_v57, %v6339_v40  ;;  %v1805_v46 = vmul.f32 %v5501_v43, %v6340_v55 }
 0x146   : > { %2179 = vmatprep.subr.bf16.mxu1 %v1934_v62  ;;  %v1821_v48 = vmul.f32 %v5501_v43, %v5076_v26  ;;  %v1772_v63 = vmul.f32 %v5504_v18, %v5092_v14  ;;  %v1788_v4 = vmul.f32 %v5504_v18, %v5096_v33  ;;  %v1918_v60 = vpack.c.bf16 %v1822_v3, %v1806_v16 }
 0x147   : > { %2139 = vmatpush1.bf16.msra.mxu0 %v1931_v45  ;;  %v1774_v6 = vmul.f32 %v5506_v0, %v5100_v7  ;;  %v1790_v36 = vmul.f32 %v5506_v0, %v5104_v51  ;;  %v1915_v54 = vpack.c.bf16 %v1819_v44, %v1803_v42  ;;  %v1771_v26 = vmul.f32 %v5498_v57, %v5110_v8 }
 0x148   : > { %2140 = vmatprep.subr.bf16.mxu0 %v1916_v27  ;;  %v1787_v14 = vmul.f32 %v5498_v57, %v5116_v10  ;;  %v1917_v33 = vpack.c.bf16 %v1821_v48, %v1805_v46  ;;  %v1900_v5 = vpack.c.bf16 %v1788_v4, %v1772_v63  ;;  %v1773_v2 = vmul.f32 %v5501_v43, %v5121_v56  ;;  %v6342_v46 = vld [vmem:[#allocation65_spill] sm:$0xff]  ;;  %v6343_v4 = vld [vmem:[#allocation74_spill] sm:$0xff] }
 0x149   : > { %2180 = vmatpush1.bf16.msra.mxu1 %v1933_v37  ;;  %v1789_v7 = vmul.f32 %v5501_v43, %v5125_v21  ;;  %v1902_v59 = vpack.c.bf16 %v1790_v36, %v1774_v6  ;;  %v6345_v6 = vld [vmem:[#allocation67_spill] sm:$0xff] }
 0x14a   : > { %2181 = vmatprep.subr.bf16.mxu1 %v1918_v60  ;;  %v1899_v56 = vpack.c.bf16 %v1787_v14, %v1771_v26 }
 0x14b   : > { %2141 = vmatpush1.bf16.msra.mxu0 %v1915_v54  ;;  %v1901_v16 = vpack.c.bf16 %v1789_v7, %v1773_v2  ;;  %v6346_v54 = vld [vmem:[#allocation75_spill] sm:$0xff]  ;;  %v6349_v7 = vld [vmem:[#allocation78_spill] sm:$0xff] }
 0x14c   : > { %v1682_v52 = vpop.f32.mrf.mxu0  ;;  %2142 = vmatprep.subr.bf16.mxu0 %v1900_v5  ;;  %v6348_v5 = vld [vmem:[#allocation77_spill] sm:$0xff] }
 0x14d   : > { %v1683_v51 = vadd.f32 %v1682_v52, %v5325_v24  ;;  %v1723_v11 = vpop.f32.mrf.mxu1  ;;  %2182 = vmatpush1.bf16.msra.mxu1 %v1917_v33  ;;  %v6347_v52 = vld [vmem:[#allocation76_spill] sm:$0xff] }
 0x14e   : > { %v1724_v41 = vadd.f32 %v1723_v11, %v5325_v24  ;;  %v1684_v8 = vpop.f32.mrf.mxu0  ;;  %2183 = vmatprep.subr.bf16.mxu1 %v1902_v59 }
 0x14f   : > { %v5574_v10 = vmax.f32 %v1683_v51, 0.0  ;;  %v1685_v58 = vadd.f32 %v1684_v8, %v5325_v24  ;;  %v1725_v62 = vpop.f32.mrf.mxu1  ;;  %2143 = vmatpush1.bf16.msra.mxu0 %v1899_v56 }
 0x150   : > { %v5577_v15 = vmax.f32 %v1724_v41, 0.0  ;;  %v1726_v21 = vadd.f32 %v1725_v62, %v5325_v24  ;;  %v1686_v39 = vpop.f32.mrf.mxu0  ;;  %v6341_v24 = vld [vmem:[#allocation64_spill] sm:$0xff]  ;;  %v6350_v41 = vld [vmem:[#allocation79_spill] sm:$0xff] }
 0x151   : > { %v5580_v3 = vmax.f32 %v1685_v58, 0.0  ;;  %v1727_v45 = vpop.f32.mrf.mxu1  ;;  %2184 = vmatpush1.bf16.msra.mxu1 %v1901_v16  ;;  %v1871_v27 = vmul.f32 %v5574_v10, %v5141_v29  ;;  %v1887_v42 = vmul.f32 %v5574_v10, %v5145_v25  ;;  %v6344_v25 = vld [vmem:[#allocation66_spill] sm:$0xff]  ;;  %v1839_v14 = vmul.f32 %v5574_v10, %v5191_v32  ;;  %v6351_v58 = vld [vmem:[#allocation80_spill] sm:$0xff]  ;;  %v6352_v16 = vld [vmem:[#allocation81_spill] sm:$0xff] }
 0x152   : > { %v5582_v37 = vmax.f32 %v1726_v21, 0.0  ;;  %v1873_v40 = vmul.f32 %v5577_v15, %v5149_v13  ;;  %v1687_v44 = vpop.f32.mrf.mxu0  ;;  %v1889_v63 = vmul.f32 %v5577_v15, %v5153_v50  ;;  %3802 = vmatmul.mubr.msk.bf16.vlgmr.msra.gmra.mxu0 %vm1398_vm0, %v5414_v49  ;;  %v1855_v51 = vmul.f32 %v5574_v10, %v6349_v7  ;;  %v4146_v7 = vld [vmem:[%s6095_s5 + $0x30] sm:$0xff]  }
 0x153   : > { %v1872_v55 = vmul.f32 %v5580_v3, %v6341_v24  ;;  %v1888_v48 = vmul.f32 %v5580_v3, %v6342_v46  ;;  %v1840_v60 = vmul.f32 %v5580_v3, %v6343_v4  ;;  %v1728_v29 = vpop.f32.mrf.mxu1  ;;  %v1856_v26 = vmul.f32 %v5580_v3, %v6346_v54  ;;  %2242 = vmatprep.mubr.bf16.mxu0 %v6220_v53  ;;  %v6354_v44 = vld [vmem:[#allocation83_spill] sm:$0xff] }
 0x154   : > { %v1874_v13 = vmul.f32 %v5582_v37, %v6344_v25  ;;  %v1890_v36 = vmul.f32 %v5582_v37, %v6345_v6  ;;  %3803 = vmatmul.mubr.msk.bf16.vlgmr.msra.gmra.mxu1 %vm1398_vm0, %v5414_v49  ;;  %v1842_v33 = vmul.f32 %v5582_v37, %v6347_v52  ;;  %v1858_v2 = vmul.f32 %v5582_v37, %v6348_v5  ;;  %v4144_v5 = vld [vmem:[%s6095_s5 + $0x70] sm:$0xff]  }
 0x155   : > { %v1952_v50 = vpack.c.bf16 %v1888_v48, %v1872_v55  ;;  %v1951_v59 = vpack.c.bf16 %v1887_v42, %v1871_v27  ;;  %v1841_v8 = vmul.f32 %v5577_v15, %v6350_v41  ;;  %v1857_v32 = vmul.f32 %v5577_v15, %v6351_v58  ;;  %v6353_v27 = vld [vmem:[#allocation82_spill] sm:$0xff]  ;;  %v6355_v48 = vld [vmem:[#allocation84_spill] sm:$0xff]  ;;  %2283 = vmatprep.mubr.bf16.mxu1 %v6220_v53  ;;  %v4153_v58 = vld [vmem:[%s6095_s5 + $0xe0] sm:$0xff]  }
 0x156   : > { %v1954_v11 = vpack.c.bf16 %v1890_v36, %v1874_v13  ;;  %v1953_v62 = vpack.c.bf16 %v1889_v63, %v1873_v40  ;;  %v1936_v56 = vpack.c.bf16 %v1856_v26, %v1840_v60  ;;  %v1808_v21 = vmul.f32 %v5580_v3, %v5221_v30  ;;  %v6356_v63 = vld [vmem:[#allocation85_spill] sm:$0xff]  ;;  %v4151_v41 = vld [vmem:[%s6095_s5 + $0xa8] sm:$0xff]  }
 0x157   : > { %2218 = vmatprep.subr.bf16.mxu0 %v1952_v50  ;;  %v1824_v39 = vmul.f32 %v5580_v3, %v6352_v16  ;;  %v1938_v45 = vpack.c.bf16 %v1858_v2, %v1842_v33  ;;  %v1810_v42 = vmul.f32 %v5582_v37, %v6353_v27  ;;  %v1826_v24 = vmul.f32 %v5582_v37, %v6354_v44  ;;  %v4140_v50 = vld [vmem:[%s6095_s5 + $0x78] sm:$0xff]   ;;  %v4145_v2 = vld [vmem:[%s6095_s5 + $0xf0] sm:$0xff]  }
 0x158   : > { %2259 = vmatprep.subr.bf16.mxu1 %v1954_v11  ;;  %2219 = vmatpush1.bf16.msra.mxu0 %v1951_v59  ;;  %v1935_v55 = vpack.c.bf16 %v1855_v51, %v1839_v14  ;;  %v1937_v40 = vpack.c.bf16 %v1857_v32, %v1841_v8  ;;  %v1807_v30 = vmul.f32 %v5574_v10, %v6355_v48  ;;  %v6357_v14 = vld [vmem:[#allocation86_spill] sm:$0xff]  ;;  %v4147_v51 = vld [vmem:[%s6095_s5 + $0xb0] sm:$0xff]   ;;  %v4148_v11 = vld [vmem:[%s6095_s5 + $0x68] sm:$0xff]  }
 0x159   : > { %2260 = vmatpush1.bf16.msra.mxu1 %v1953_v62  ;;  %2220 = vmatprep.subr.bf16.mxu0 %v1936_v56  ;;  %v1920_v46 = vpack.c.bf16 %v1824_v39, %v1808_v21  ;;  %v1823_v4 = vmul.f32 %v5574_v10, %v6356_v63  ;;  %v1809_v60 = vmul.f32 %v5577_v15, %v5260_v47  ;;  %v4143_v33 = vld [vmem:[%s6095_s5 + $0xb8] sm:$0xff]   ;;  %v4150_v59 = vld [vmem:[%s6095_s5 + $0x28] sm:$0xff]   ;;  %v4152_v8 = vld [vmem:[%s6095_s5 + $0x60] sm:$0xff]  }
 0x15a   : > { %2261 = vmatprep.subr.bf16.mxu1 %v1938_v45  ;;  %v1825_v29 = vmul.f32 %v5577_v15, %v5264_v20  ;;  %v1776_v25 = vmul.f32 %v5580_v3, %v5268_v12  ;;  %v1792_v13 = vmul.f32 %v5580_v3, %v5272_v1  ;;  %v1922_v6 = vpack.c.bf16 %v1826_v24, %v1810_v42  ;;  %v4154_v32 = vld [vmem:[%s6095_s5 + $0x20] sm:$0xff]   ;;  %v4156_v56 = vld [vmem:[%s6095_s5 + $0x58] sm:$0xff]   ;;  %v4160_v45 = vld [vmem:[%s6095_s5 + $0x50] sm:$0xff]  }
 0x15b   : > { %v1778_v36 = vmul.f32 %v5582_v37, %v5280_v19  ;;  %v1794_v54 = vmul.f32 %v5582_v37, %v5289_v61  ;;  %v1919_v47 = vpack.c.bf16 %v1823_v4, %v1807_v30  ;;  %v1775_v20 = vmul.f32 %v5574_v10, %v5295_v22  ;;  %v4155_v62 = vld [vmem:[%s6095_s5 + $0xa0] sm:$0xff]   ;;  %v4157_v21 = vld [vmem:[%s6095_s5 + $0xd8] sm:$0xff]   ;;  %v4161_v27 = vld [vmem:[%s6095_s5 + $0xd0] sm:$0xff]  }
 0x15c   : > { %2221 = vmatpush1.bf16.msra.mxu0 %v1935_v55  ;;  %v1791_v1 = vmul.f32 %v5574_v10, %v5299_v38  ;;  %v1921_v12 = vpack.c.bf16 %v1825_v29, %v1809_v60  ;;  %v1904_v53 = vpack.c.bf16 %v1792_v13, %v1776_v25  ;;  %v1777_v26 = vmul.f32 %v5577_v15, %v5305_v17  ;;  %v4141_v38 = vld [vmem:[%s6095_s5 + $0xf8] sm:$0xff]   ;;  %v4162_v42 = vld [vmem:[%s6095_s5 + $0x10] sm:$0xff]   ;;  %v4164_v24 = vld [vmem:[%s6095_s5 + $0x48] sm:$0xff]   ;;  %v5760_v25 = vpop.permute.xlu0 %1958 }
 0x15d   : > { %2262 = vmatpush1.bf16.msra.mxu1 %v1937_v40  ;;  %2222 = vmatprep.subr.bf16.mxu0 %v1920_v46  ;;  %v1793_v19 = vmul.f32 %v5577_v15, %v6357_v14  ;;  %v1906_v61 = vpack.c.bf16 %v1794_v54, %v1778_v36  ;;  %v4142_v17 = vld [vmem:[%s6095_s5 + $0x38] sm:$0xff]   ;;  %v4163_v44 = vld [vmem:[%s6095_s5 + $0x90] sm:$0xff]   ;;  %v4165_v55 = vld [vmem:[%s6095_s5 + $0xc8] sm:$0xff]  }
 0x15e   : > { %2263 = vmatprep.subr.bf16.mxu1 %v1922_v6  ;;  %v1903_v22 = vpack.c.bf16 %v1791_v1, %v1775_v20  ;;  %v4158_v16 = vld [vmem:[%s6095_s5 + $0x18] sm:$0xff]   ;;  %v4166_v40 = vld [vmem:[%s6095_s5 + $0x8] sm:$0xff]   ;;  %v4168_v48 = vld [vmem:[%s6095_s5 + $0x40] sm:$0xff]  }
 0x15f   : > { %v1905_v52 = vpack.c.bf16 %v1793_v19, %v1777_v26  ;;  %v4159_v39 = vld [vmem:[%s6095_s5 + $0x98] sm:$0xff]   ;;  %v4167_v46 = vld [vmem:[%s6095_s5 + $0x88] sm:$0xff]   ;;  %v4169_v30 = vld [vmem:[%s6095_s5 + $0xc0] sm:$0xff]  }
 0x160   : > { %2223 = vmatpush1.bf16.msra.mxu0 %v1919_v47  ;;  %v4170_v63 = vld [vmem:[%s6095_s5] sm:$0xff]   ;;  %v4172_v60 = vld [vmem:[%s6095_s5 + $0x178] sm:$0xff]  }
 0x161   : > { %2264 = vmatpush1.bf16.msra.mxu1 %v1921_v12  ;;  %2224 = vmatprep.subr.bf16.mxu0 %v1904_v53  ;;  %v4171_v4 = vld [vmem:[%s6095_s5 + $0x80] sm:$0xff]   ;;  %v4173_v29 = vld [vmem:[%s6095_s5 + $0x1f8] sm:$0xff]  }
 0x162   : > { %2265 = vmatprep.subr.bf16.mxu1 %v1906_v61 }
 0x164   : > { %2225 = vmatpush1.bf16.msra.mxu0 %v1903_v22 }
 0x165   : > { %2266 = vmatpush1.bf16.msra.mxu1 %v1905_v52  ;;  %3937 = vmatprep.subr.bf16.mxu0 %v4140_v50 }
 0x166   : > { %3959 = vmatprep.subr.bf16.mxu1 %v4141_v38 }
 0x167   : > { %3804 = vmatmul.mubr.msk.bf16.vlgmr.msra.gmra.mxu0 %vm1398_vm0, %v5414_v49 }
 0x168   : > { %3805 = vmatmul.mubr.msk.bf16.vlgmr.msra.gmra.mxu1 %vm1398_vm0, %v5414_v49  ;;  %3938 = vmatpush3.bf16.msra.mxu0 %v4142_v17  ;;  %v4149_v49 = vld [vmem:[%s6095_s5 + $0xe8] sm:$0xff]   ;;  %v4174_v17 = vld [vmem:[%s6095_s5 + $0x138] sm:$0xff]  }
 0x169   : > { %3960 = vmatpush3.bf16.msra.mxu1 %v4143_v33  ;;  %3939 = vmatprep.subr.bf16.mxu0 %v4144_v5 }
 0x16a   : > { %3961 = vmatprep.subr.bf16.mxu1 %v4145_v2  ;;  %v4175_v2 = vld [vmem:[%s6095_s5 + $0x1b8] sm:$0xff]  }
 0x16c   : > { %3940 = vmatpush3.bf16.msra.mxu0 %v4146_v7  ;;  %v4176_v7 = vld [vmem:[%s6095_s5 + $0x170] sm:$0xff]  }
 0x16d   : > { %3962 = vmatpush3.bf16.msra.mxu1 %v4147_v51  ;;  %3941 = vmatprep.subr.bf16.mxu0 %v4148_v11  ;;  %v4181_v11 = vld [vmem:[%s6095_s5 + $0x1e8] sm:$0xff]  }
 0x16e   : > { %3963 = vmatprep.subr.bf16.mxu1 %v4149_v49  ;;  %v4182_v49 = vld [vmem:[%s6095_s5 + $0x128] sm:$0xff]  }
 0x170   : > { %3942 = vmatpush3.bf16.msra.mxu0 %v4150_v59  ;;  %v4183_v59 = vld [vmem:[%s6095_s5 + $0x1a8] sm:$0xff]  }
 0x171   : > { %3964 = vmatpush3.bf16.msra.mxu1 %v4151_v41  ;;  %3943 = vmatprep.subr.bf16.mxu0 %v4152_v8  ;;  %v4184_v41 = vld [vmem:[%s6095_s5 + $0x160] sm:$0xff]  }
 0x172   : > { %3965 = vmatprep.subr.bf16.mxu1 %v4153_v58  ;;  %v4185_v8 = vld [vmem:[%s6095_s5 + $0x1e0] sm:$0xff]  }
 0x173   : > { %v4186_v58 = vld [vmem:[%s6095_s5 + $0x120] sm:$0xff]  }
 0x174   : > { %3944 = vmatpush3.bf16.msra.mxu0 %v4154_v32 }
 0x175   : > { %3966 = vmatpush3.bf16.msra.mxu1 %v4155_v62  ;;  %3945 = vmatprep.subr.bf16.mxu0 %v4156_v56  ;;  %v4187_v62 = vld [vmem:[%s6095_s5 + $0x1a0] sm:$0xff]   ;;  %v4188_v56 = vld [vmem:[%s6095_s5 + $0x158] sm:$0xff]  }
 0x176   : > { %3967 = vmatprep.subr.bf16.mxu1 %v4157_v21 }
 0x178   : > { %3946 = vmatpush3.bf16.msra.mxu0 %v4158_v16  ;;  %v4189_v16 = vld [vmem:[%s6095_s5 + $0x1d8] sm:$0xff]  }
 0x179   : > { %3968 = vmatpush3.bf16.msra.mxu1 %v4159_v39  ;;  %3947 = vmatprep.subr.bf16.mxu0 %v4160_v45 }
 0x17a   : > { %3969 = vmatprep.subr.bf16.mxu1 %v4161_v27 }
 0x17c   : > { %3948 = vmatpush3.bf16.msra.mxu0 %v4162_v42  ;;  %v4190_v42 = vld [vmem:[%s6095_s5 + $0x118] sm:$0xff]  }
 0x17d   : > { %3970 = vmatpush3.bf16.msra.mxu1 %v4163_v44  ;;  %3949 = vmatprep.subr.bf16.mxu0 %v4164_v24  ;;  %v4191_v24 = vld [vmem:[%s6095_s5 + $0x198] sm:$0xff]  }
 0x17e   : > { %3971 = vmatprep.subr.bf16.mxu1 %v4165_v55 }
 0x180   : > { %3950 = vmatpush3.bf16.msra.mxu0 %v4166_v40  ;;  %v4192_v40 = vld [vmem:[%s6095_s5 + $0x150] sm:$0xff]  }
 0x181   : > { %3972 = vmatpush3.bf16.msra.mxu1 %v4167_v46  ;;  %3951 = vmatprep.subr.bf16.mxu0 %v4168_v48 }
 0x182   : > { %3973 = vmatprep.subr.bf16.mxu1 %v4169_v30  ;;  %v4193_v30 = vld [vmem:[%s6095_s5 + $0x1d0] sm:$0xff]  }
 0x184   : > { %3952 = vmatpush3.bf16.msra.mxu0 %v4170_v63 }
 0x185   : > { %3974 = vmatpush3.bf16.msra.mxu1 %v4171_v4  ;;  %3981 = vmatprep.subr.bf16.mxu0 %v4172_v60 }
 0x186   : > { %4003 = vmatprep.subr.bf16.mxu1 %v4173_v29 }
 0x1d7   : > { %v1998_v13 = vpop.f32.mrf.mxu0 }
 0x1d8   : > { %v1999_v6 = vadd.f32 %v1998_v13, %v5760_v25  ;;  %v2039_v36 = vpop.f32.mrf.mxu1  ;;  %v4194_v13 = vld [vmem:[%s6095_s5 + $0x110] sm:$0xff]  }
 0x1d9   : > { %v2040_v54 = vadd.f32 %v2039_v36, %v5760_v25  ;;  %v2000_v47 = vpop.f32.mrf.mxu0  ;;  %v4195_v36 = vld [vmem:[%s6095_s5 + $0x190] sm:$0xff]  }
 0x1da   : > { %v2001_v20 = vadd.f32 %v2000_v47, %v5760_v25  ;;  %v2041_v1 = vpop.f32.mrf.mxu1  ;;  %v2292_v12 = vmax.f32 %v1999_v6, 0.0 }
 0x1db   : > { %v2042_v53 = vadd.f32 %v2041_v1, %v5760_v25  ;;  %v2002_v26 = vpop.f32.mrf.mxu0  ;;  %v2294_v14 = vmax.f32 %v2040_v54, 0.0  ;;  %v4196_v54 = vld [vmem:[%s6095_s5 + $0x148] sm:$0xff]   ;;  %v4200_v1 = vld [vmem:[%s6095_s5 + $0x140] sm:$0xff]  }
 0x1dc   : > { %v2293_v19 = vmax.f32 %v2001_v20, 0.0  ;;  %v2043_v61 = vpop.f32.mrf.mxu1  ;;  %v2356_v33 = vpack.c.bf16 %v2292_v12, %v5329_v31  ;;  %v4178_v31 = vld [vmem:[%s6095_s5 + $0x130] sm:$0xff]   ;;  %v4199_v20 = vld [vmem:[%s6095_s5 + $0x188] sm:$0xff]   ;;  %v4202_v26 = vld [vmem:[%s6095_s5 + $0x100] sm:$0xff]  }
 0x1dd   : > { %v2295_v50 = vmax.f32 %v2042_v53, 0.0  ;;  %v2003_v22 = vpop.f32.mrf.mxu0  ;;  %v2358_v51 = vpack.c.bf16 %v2294_v14, %v5332_v28  ;;  %v4180_v28 = vld [vmem:[%s6095_s5 + $0x168] sm:$0xff]   ;;  %v4201_v53 = vld [vmem:[%s6095_s5 + $0x1c0] sm:$0xff]   ;;  %v4204_v61 = vld [vmem:[%s6095_s5 + $0x278] sm:$0xff]  }
 0x1de   : > { %v2357_v38 = vpack.c.bf16 %v2293_v19, %v5335_v23  ;;  %v2044_v52 = vpop.f32.mrf.mxu1  ;;  %v4177_v23 = vld [vmem:[%s6095_s5 + $0x1f0] sm:$0xff]   ;;  %v4203_v19 = vld [vmem:[%s6095_s5 + $0x180] sm:$0xff]   ;;  %v4205_v22 = vld [vmem:[%s6095_s5 + $0x2f8] sm:$0xff]  }
 0x1df   : > { %v2359_v5 = vpack.c.bf16 %v2295_v50, %v5339_v9  ;;  %v4179_v9 = vld [vmem:[%s6095_s5 + $0x1b0] sm:$0xff]   ;;  %v6358_v52 = vld [vmem:[#allocation3_spill] sm:$0xff] }
 0x1e0   : > { %3428 = vmatprep.mubr.bf16.mxu0 %v2357_v38  ;;  %v4206_v38 = vld [vmem:[%s6095_s5 + $0x238] sm:$0xff]  }
 0x1e1   : > { %3469 = vmatprep.mubr.bf16.mxu1 %v2359_v5  ;;  %3429 = vmatmul.mubr.bf16.vlgmr.msra.gmra.mxu0 %v2356_v33  ;;  %v4207_v33 = vld [vmem:[%s6095_s5 + $0x2b8] sm:$0xff]   ;;  %v4208_v5 = vld [vmem:[%s6095_s5 + $0x270] sm:$0xff]  }
 0x1e2   : > { %3470 = vmatmul.mubr.bf16.vlgmr.msra.gmra.mxu1 %v2358_v51  ;;  %3982 = vmatpush3.bf16.msra.mxu0 %v4174_v17  ;;  %v4209_v51 = vld [vmem:[%s6095_s5 + $0x2f0] sm:$0xff]  }
 0x1e3   : > { %4004 = vmatpush3.bf16.msra.mxu1 %v4175_v2  ;;  %3983 = vmatprep.subr.bf16.mxu0 %v4176_v7  ;;  %v6359_v2 = vld [vmem:[#allocation4_spill] sm:$0xff] }
 0x1e4   : > { %4005 = vmatprep.subr.bf16.mxu1 %v4177_v23  ;;  %v4210_v23 = vld [vmem:[%s6095_s5 + $0x230] sm:$0xff]  }
 0x1e6   : > { %3984 = vmatpush3.bf16.msra.mxu0 %v4178_v31  ;;  %v4211_v31 = vld [vmem:[%s6095_s5 + $0x2b0] sm:$0xff]  }
 0x1e7   : > { %4006 = vmatpush3.bf16.msra.mxu1 %v4179_v9  ;;  %3985 = vmatprep.subr.bf16.mxu0 %v4180_v28  ;;  %v4212_v9 = vld [vmem:[%s6095_s5 + $0x268] sm:$0xff]  }
 0x1e8   : > { %4007 = vmatprep.subr.bf16.mxu1 %v4181_v11  ;;  %v4213_v28 = vld [vmem:[%s6095_s5 + $0x2e8] sm:$0xff]  }
 0x1e9   : > { %v4214_v11 = vld [vmem:[%s6095_s5 + $0x228] sm:$0xff]  }
 0x1ea   : > { %3986 = vmatpush3.bf16.msra.mxu0 %v4182_v49  ;;  %v4215_v49 = vld [vmem:[%s6095_s5 + $0x2a8] sm:$0xff]  }
 0x1eb   : > { %4008 = vmatpush3.bf16.msra.mxu1 %v4183_v59  ;;  %3987 = vmatprep.subr.bf16.mxu0 %v4184_v41  ;;  %v4216_v59 = vld [vmem:[%s6095_s5 + $0x260] sm:$0xff]  }
 0x1ec   : > { %4009 = vmatprep.subr.bf16.mxu1 %v4185_v8  ;;  %v4217_v41 = vld [vmem:[%s6095_s5 + $0x2e0] sm:$0xff]  }
 0x1ed   : > { %v4218_v8 = vld [vmem:[%s6095_s5 + $0x220] sm:$0xff]  }
 0x1ee   : > { %v2080_v32 = vpop.f32.mrf.mxu0  ;;  %3988 = vmatpush3.bf16.msra.mxu0 %v4186_v58 }
 0x1ef   : > { %v2121_v21 = vpop.f32.mrf.mxu1  ;;  %4010 = vmatpush3.bf16.msra.mxu1 %v4187_v62  ;;  %3989 = vmatprep.subr.bf16.mxu0 %v4188_v56  ;;  %v2081_v47 = vadd.f32 %v2080_v32, %v5760_v25  ;;  %v4219_v32 = vld [vmem:[%s6095_s5 + $0x2a0] sm:$0xff]   ;;  %v4220_v62 = vld [vmem:[%s6095_s5 + $0x258] sm:$0xff]  }
 0x1f0   : > { %v2082_v39 = vpop.f32.mrf.mxu0  ;;  %4011 = vmatprep.subr.bf16.mxu1 %v4189_v16  ;;  %v2122_v12 = vadd.f32 %v2121_v21, %v5760_v25  ;;  %v4221_v21 = vld [vmem:[%s6095_s5 + $0x2d8] sm:$0xff]  }
 0x1f1   : > { %v2083_v45 = vadd.f32 %v2082_v39, %v5760_v25  ;;  %v2123_v27 = vpop.f32.mrf.mxu1  ;;  %v2296_v14 = vmax.f32 %v2081_v47, 0.0 }
 0x1f2   : > { %v2124_v44 = vadd.f32 %v2123_v27, %v5760_v25  ;;  %v2084_v55 = vpop.f32.mrf.mxu0  ;;  %3990 = vmatpush3.bf16.msra.mxu0 %v4190_v42  ;;  %v2298_v50 = vmax.f32 %v2122_v12, 0.0  ;;  %v4222_v27 = vld [vmem:[%s6095_s5 + $0x218] sm:$0xff]  }
 0x1f3   : > { %v2297_v46 = vmax.f32 %v2083_v45, 0.0  ;;  %v2125_v48 = vpop.f32.mrf.mxu1  ;;  %4012 = vmatpush3.bf16.msra.mxu1 %v4191_v24  ;;  %3991 = vmatprep.subr.bf16.mxu0 %v4192_v40  ;;  %v2360_v17 = vpack.c.bf16 %v2296_v14, %v6358_v52  ;;  %v4223_v24 = vld [vmem:[%s6095_s5 + $0x298] sm:$0xff]   ;;  %v4224_v55 = vld [vmem:[%s6095_s5 + $0x250] sm:$0xff]  }
 0x1f4   : > { %v2299_v63 = vmax.f32 %v2124_v44, 0.0  ;;  %v2085_v4 = vpop.f32.mrf.mxu0  ;;  %4013 = vmatprep.subr.bf16.mxu1 %v4193_v30  ;;  %v2362_v7 = vpack.c.bf16 %v2298_v50, %v6359_v2  ;;  %v4225_v48 = vld [vmem:[%s6095_s5 + $0x2d0] sm:$0xff]   ;;  %v4238_v50 = vld [vmem:[%s6095_s5 + $0x338] sm:$0xff]  }
 0x1f5   : > { %v2361_v60 = vpack.c.bf16 %v2297_v46, %v5416_v35  ;;  %v2126_v29 = vpop.f32.mrf.mxu1  ;;  %v4197_v35 = vld [vmem:[%s6095_s5 + $0x1c8] sm:$0xff]   ;;  %v4239_v52 = vld [vmem:[%s6095_s5 + $0x3b8] sm:$0xff]  }
 0x1f6   : > { %v2363_v6 = vpack.c.bf16 %v2299_v63, %v5418_v34  ;;  %3992 = vmatpush3.bf16.msra.mxu0 %v4194_v13  ;;  %v4198_v34 = vld [vmem:[%s6095_s5 + $0x108] sm:$0xff]   ;;  %v4226_v29 = vld [vmem:[%s6095_s5 + $0x210] sm:$0xff]  }
 0x1f7   : > { %3510 = vmatprep.mubr.bf16.mxu0 %v2361_v60  ;;  %4014 = vmatpush3.bf16.msra.mxu1 %v4195_v36  ;;  %v4228_v36 = vld [vmem:[%s6095_s5 + $0x248] sm:$0xff]  }
 0x1f8   : > { %3551 = vmatprep.mubr.bf16.mxu1 %v2363_v6  ;;  %3993 = vmatprep.subr.bf16.mxu0 %v4196_v54  ;;  %v4227_v6 = vld [vmem:[%s6095_s5 + $0x290] sm:$0xff]  }
 0x1f9   : > { %4015 = vmatprep.subr.bf16.mxu1 %v4197_v35  ;;  %v4231_v35 = vld [vmem:[%s6095_s5 + $0x288] sm:$0xff]  }
 0x1fa   : > { %3994 = vmatpush3.bf16.msra.mxu0 %v4198_v34  ;;  %v4232_v34 = vld [vmem:[%s6095_s5 + $0x240] sm:$0xff]  }
 0x1fb   : > { %4016 = vmatpush3.bf16.msra.mxu1 %v4199_v20  ;;  %3995 = vmatprep.subr.bf16.mxu0 %v4200_v1  ;;  %v4233_v20 = vld [vmem:[%s6095_s5 + $0x2c0] sm:$0xff]  }
 0x1fc   : > { %4017 = vmatprep.subr.bf16.mxu1 %v4201_v53  ;;  %v4234_v1 = vld [vmem:[%s6095_s5 + $0x200] sm:$0xff]  }
 0x1fd   : > { %v4235_v53 = vld [vmem:[%s6095_s5 + $0x280] sm:$0xff]  }
 0x1fe   : > { %3996 = vmatpush3.bf16.msra.mxu0 %v4202_v26  ;;  %v4236_v26 = vld [vmem:[%s6095_s5 + $0x378] sm:$0xff]  }
 0x1ff   : > { %4018 = vmatpush3.bf16.msra.mxu1 %v4203_v19  ;;  %4025 = vmatprep.subr.bf16.mxu0 %v4204_v61  ;;  %v4237_v19 = vld [vmem:[%s6095_s5 + $0x3f8] sm:$0xff]  }
 0x200   : > { %4047 = vmatprep.subr.bf16.mxu1 %v4205_v22 }
 0x201   : > { %3511 = vmatmul.mubr.bf16.vlgmr.msra.gmra.mxu0 %v2360_v17  ;;  %v4240_v17 = vld [vmem:[%s6095_s5 + $0x370] sm:$0xff]  }
 0x202   : > { %3552 = vmatmul.mubr.bf16.vlgmr.msra.gmra.mxu1 %v2362_v7  ;;  %4026 = vmatpush3.bf16.msra.mxu0 %v4206_v38 }
 0x203   : > { %4048 = vmatpush3.bf16.msra.mxu1 %v4207_v33  ;;  %4027 = vmatprep.subr.bf16.mxu0 %v4208_v5 }
 0x204   : > { %4049 = vmatprep.subr.bf16.mxu1 %v4209_v51 }
 0x206   : > { %4028 = vmatpush3.bf16.msra.mxu0 %v4210_v23  ;;  %v4242_v23 = vld [vmem:[%s6095_s5 + $0x330] sm:$0xff]  }
 0x207   : > { %4050 = vmatpush3.bf16.msra.mxu1 %v4211_v31  ;;  %4029 = vmatprep.subr.bf16.mxu0 %v4212_v9  ;;  %v4243_v9 = vld [vmem:[%s6095_s5 + $0x3b0] sm:$0xff]  }
 0x208   : > { %4051 = vmatprep.subr.bf16.mxu1 %v4213_v28 }
 0x20a   : > { %4030 = vmatpush3.bf16.msra.mxu0 %v4214_v11 }
 0x20b   : > { %4052 = vmatpush3.bf16.msra.mxu1 %v4215_v49  ;;  %4031 = vmatprep.subr.bf16.mxu0 %v4216_v59  ;;  %v4244_v49 = vld [vmem:[%s6095_s5 + $0x368] sm:$0xff]  }
 0x20c   : > { %4053 = vmatprep.subr.bf16.mxu1 %v4217_v41 }
 0x20e   : > { %4032 = vmatpush3.bf16.msra.mxu0 %v4218_v8  ;;  %v4245_v8 = vld [vmem:[%s6095_s5 + $0x3e8] sm:$0xff]  }
 0x20f   : > { %4054 = vmatpush3.bf16.msra.mxu1 %v4219_v32  ;;  %4033 = vmatprep.subr.bf16.mxu0 %v4220_v62  ;;  %v4246_v62 = vld [vmem:[%s6095_s5 + $0x328] sm:$0xff]  }
 0x210   : > { %4055 = vmatprep.subr.bf16.mxu1 %v4221_v21  ;;  %v4250_v21 = vld [vmem:[%s6095_s5 + $0x320] sm:$0xff]  }
 0x212   : > { %v2162_v58 = vpop.f32.mrf.mxu0  ;;  %4034 = vmatpush3.bf16.msra.mxu0 %v4222_v27  ;;  %v4254_v27 = vld [vmem:[%s6095_s5 + $0x318] sm:$0xff]  }
 0x213   : > { %4056 = vmatpush3.bf16.msra.mxu1 %v4223_v24  ;;  %4035 = vmatprep.subr.bf16.mxu0 %v4224_v55  ;;  %v2163_v54 = vadd.f32 %v2162_v58, %v5760_v25  ;;  %v4257_v24 = vld [vmem:[%s6095_s5 + $0x3d0] sm:$0xff]  }
 0x214   : > { %v2203_v56 = vpop.f32.mrf.mxu1  ;;  %v2164_v16 = vpop.f32.mrf.mxu0  ;;  %4057 = vmatprep.subr.bf16.mxu1 %v4225_v48  ;;  %v4258_v55 = vld [vmem:[%s6095_s5 + $0x310] sm:$0xff]   ;;  %v4261_v48 = vld [vmem:[%s6095_s5 + $0x3c8] sm:$0xff]  }
 0x215   : > { %v2165_v39 = vadd.f32 %v2164_v16, %v5760_v25  ;;  %v2204_v47 = vadd.f32 %v2203_v56, %v5760_v25  ;;  %v2300_v12 = vmax.f32 %v2163_v54, 0.0  ;;  %v4247_v56 = vld [vmem:[%s6095_s5 + $0x3a8] sm:$0xff]   ;;  %v4251_v16 = vld [vmem:[%s6095_s5 + $0x3a0] sm:$0xff]  }
 0x216   : > { %v2205_v45 = vpop.f32.mrf.mxu1  ;;  %v2166_v44 = vpop.f32.mrf.mxu0  ;;  %4036 = vmatpush3.bf16.msra.mxu0 %v4226_v29 }
 0x217   : > { %v2206_v42 = vadd.f32 %v2205_v45, %v5760_v25  ;;  %v2301_v40 = vmax.f32 %v2165_v39, 0.0  ;;  %4058 = vmatpush3.bf16.msra.mxu1 %v4227_v6  ;;  %4037 = vmatprep.subr.bf16.mxu0 %v4228_v36  ;;  %v2302_v14 = vmax.f32 %v2204_v47, 0.0  ;;  %v2364_v22 = vpack.c.bf16 %v2300_v12, %v5498_v57  ;;  %v4241_v57 = vld [vmem:[%s6095_s5 + $0x3f0] sm:$0xff]   ;;  %v4252_v39 = vld [vmem:[%s6095_s5 + $0x358] sm:$0xff]   ;;  %v4266_v6 = vld [vmem:[%s6095_s5 + $0x300] sm:$0xff]  }
 0x218   : > { %v2207_v46 = vpop.f32.mrf.mxu1  ;;  %v2167_v63 = vpop.f32.mrf.mxu0  ;;  %v4253_v45 = vld [vmem:[%s6095_s5 + $0x3d8] sm:$0xff]   ;;  %v4256_v44 = vld [vmem:[%s6095_s5 + $0x350] sm:$0xff]  }
 0x219   : > { %v2303_v30 = vmax.f32 %v2206_v42, 0.0  ;;  %v2365_v4 = vpack.c.bf16 %v2301_v40, %v5504_v18  ;;  %v4229_v18 = vld [vmem:[%s6095_s5 + $0x2c8] sm:$0xff]   ;;  %v2366_v33 = vpack.c.bf16 %v2302_v14, %v5501_v43  ;;  %v4255_v42 = vld [vmem:[%s6095_s5 + $0x398] sm:$0xff]   ;;  %v4259_v40 = vld [vmem:[%s6095_s5 + $0x390] sm:$0xff]  }
 0x21a   : > { %v2208_v60 = vpop.f32.mrf.mxu1  ;;  %4059 = vmatprep.subr.bf16.mxu1 %v4229_v18  ;;  %v4260_v46 = vld [vmem:[%s6095_s5 + $0x348] sm:$0xff]   ;;  %v4267_v18 = vld [vmem:[%s6095_s5 + $0x380] sm:$0xff]  }
 0x21b   : > { %v2367_v13 = vpack.c.bf16 %v2303_v30, %v5506_v0  ;;  %3592 = vmatprep.mubr.bf16.mxu0 %v2365_v4  ;;  %v4230_v0 = vld [vmem:[%s6095_s5 + $0x208] sm:$0xff]   ;;  %4060 = vmatpush3.bf16.msra.mxu1 %v4231_v35  ;;  %v4264_v60 = vld [vmem:[%s6095_s5 + $0x340] sm:$0xff]  }
 0x21c   : > { %4038 = vmatpush3.bf16.msra.mxu0 %v4230_v0  ;;  %4061 = vmatprep.subr.bf16.mxu1 %v4233_v20  ;;  %v4262_v30 = vld [vmem:[%s6095_s5 + $0x308] sm:$0xff]  }
 0x21d   : > { %3633 = vmatprep.mubr.bf16.mxu1 %v2367_v13  ;;  %4039 = vmatprep.subr.bf16.mxu0 %v4232_v34  ;;  %v4263_v4 = vld [vmem:[%s6095_s5 + $0x388] sm:$0xff]   ;;  %v4265_v13 = vld [vmem:[%s6095_s5 + $0x3c0] sm:$0xff]  }
 0x21f   : > { %4062 = vmatpush3.bf16.msra.mxu1 %v4235_v53 }
 0x220   : > { %4040 = vmatpush3.bf16.msra.mxu0 %v4234_v1  ;;  %4091 = vmatprep.subr.bf16.mxu1 %v4237_v19 }
 0x221   : > { %4069 = vmatprep.subr.bf16.mxu0 %v4236_v26 }
 0x222   : > { %3634 = vmatmul.mubr.bf16.vlgmr.msra.gmra.mxu1 %v2366_v33 }
 0x223   : > { %3593 = vmatmul.mubr.bf16.vlgmr.msra.gmra.mxu0 %v2364_v22  ;;  %4092 = vmatpush3.bf16.msra.mxu1 %v4239_v52 }
 0x224   : > { %4070 = vmatpush3.bf16.msra.mxu0 %v4238_v50  ;;  %4093 = vmatprep.subr.bf16.mxu1 %v4241_v57 }
 0x225   : > { %4071 = vmatprep.subr.bf16.mxu0 %v4240_v17 }
 0x227   : > { %v5976_v61 = vpop.f32.mrf.mxu0  ;;  %4094 = vmatpush3.bf16.msra.mxu1 %v4243_v9 }
 0x228   : > { %v5982_v38 = vpop.f32.mrf.mxu1  ;;  %4072 = vmatpush3.bf16.msra.mxu0 %v4242_v23  ;;  %4095 = vmatprep.subr.bf16.mxu1 %v4245_v8  ;;  %v2245_v63 = vadd.f32 %v5976_v61, %v5760_v25 }
 0x229   : > { %v2246_v5 = vpop.f32.mrf.mxu0  ;;  %4073 = vmatprep.subr.bf16.mxu0 %v4244_v49  ;;  %v2286_v29 = vadd.f32 %v5982_v38, %v5760_v25 }
 0x22a   : > { %v2247_v2 = vadd.f32 %v2246_v5, %v5760_v25  ;;  %v2287_v7 = vpop.f32.mrf.mxu1  ;;  %v2304_v36 = vmax.f32 %v2245_v63, 0.0 }
 0x22b   : > { %v2288_v51 = vadd.f32 %v2287_v7, %v5760_v25  ;;  %v2248_v31 = vpop.f32.mrf.mxu0  ;;  %4096 = vmatpush3.bf16.msra.mxu1 %v4247_v56  ;;  %v2306_v0 = vmax.f32 %v2286_v29, 0.0 }
 0x22c   : > { %v2305_v43 = vmax.f32 %v2247_v2, 0.0  ;;  %v2289_v28 = vpop.f32.mrf.mxu1  ;;  %4074 = vmatpush3.bf16.msra.mxu0 %v4246_v62  ;;  %v2368_v25 = vpack.c.bf16 %v2304_v36, %v5574_v10 }
 0x22d   : > { %v2307_v11 = vmax.f32 %v2288_v51, 0.0  ;;  %v2249_v59 = vpop.f32.mrf.mxu0  ;;  %v2370_v54 = vpack.c.bf16 %v2306_v0, %v5577_v15 }
 0x22e   : > { %v2369_v41 = vpack.c.bf16 %v2305_v43, %v5580_v3  ;;  %v2290_v58 = vpop.f32.mrf.mxu1  ;;  %v4248_v3 = vld [vmem:[%s6095_s5 + $0x360] sm:$0xff]  }
 0x22f   : > { %v2371_v32 = vpack.c.bf16 %v2307_v11, %v5582_v37  ;;  %v4249_v37 = vld [vmem:[%s6095_s5 + $0x3e0] sm:$0xff]   ;;  %4075 = vmatprep.subr.bf16.mxu0 %v4248_v3 }
 0x230   : > { %3674 = vmatprep.mubr.bf16.mxu0 %v2369_v41  ;;  %4097 = vmatprep.subr.bf16.mxu1 %v4249_v37 }
 0x231   : > { %3715 = vmatprep.mubr.bf16.mxu1 %v2371_v32  ;;  %4076 = vmatpush3.bf16.msra.mxu0 %v4250_v21 }
 0x232   : > { %4098 = vmatpush3.bf16.msra.mxu1 %v4251_v16  ;;  %4077 = vmatprep.subr.bf16.mxu0 %v4252_v39 }
 0x233   : > { %4099 = vmatprep.subr.bf16.mxu1 %v4253_v45 }
 0x235   : > { %4078 = vmatpush3.bf16.msra.mxu0 %v4254_v27 }
 0x236   : > { %4100 = vmatpush3.bf16.msra.mxu1 %v4255_v42  ;;  %4079 = vmatprep.subr.bf16.mxu0 %v4256_v44 }
 0x237   : > { %4101 = vmatprep.subr.bf16.mxu1 %v4257_v24 }
 0x239   : > { %4080 = vmatpush3.bf16.msra.mxu0 %v4258_v55 }
 0x23a   : > { %4102 = vmatpush3.bf16.msra.mxu1 %v4259_v40  ;;  %4081 = vmatprep.subr.bf16.mxu0 %v4260_v46 }
 0x23b   : > { %4103 = vmatprep.subr.bf16.mxu1 %v4261_v48 }
 0x23d   : > { %4082 = vmatpush3.bf16.msra.mxu0 %v4262_v30 }
 0x23e   : > { %4104 = vmatpush3.bf16.msra.mxu1 %v4263_v4  ;;  %4083 = vmatprep.subr.bf16.mxu0 %v4264_v60 }
 0x23f   : > { %4105 = vmatprep.subr.bf16.mxu1 %v4265_v13 }
 0x241   : > { %4084 = vmatpush3.bf16.msra.mxu0 %v4266_v6 }
 0x242   : > { %4106 = vmatpush3.bf16.msra.mxu1 %v4267_v18 }
 0x244   : > { %3675 = vmatmul.mubr.bf16.vlgmr.msra.gmra.mxu0 %v2368_v25 }
 0x245   : > { %3716 = vmatmul.mubr.bf16.vlgmr.msra.gmra.mxu1 %v2370_v54 }
 0x2a1   : > { %v3953_v35 = vpop.f32.mrf.mxu0 }
 0x2a2   : > { %v3975_v34 = vpop.f32.mrf.mxu1 }
 0x2a3   : > { %v3954_v47 = vpop.f32.mrf.mxu0 }
 0x2a4   : > { %v3976_v20 = vpop.f32.mrf.mxu1  ;;  %v3955_v15 = vadd.f32 %v3954_v47, %v3953_v35 }
 0x2a5   : > { %v3956_v1 = vpop.f32.mrf.mxu0  ;;  %v3977_v33 = vadd.f32 %v3976_v20, %v3975_v34 }
 0x2a6   : > { %v3978_v12 = vpop.f32.mrf.mxu1 }
 0x2a7   : > { %v3957_v53 = vpop.f32.mrf.mxu0  ;;  %v3472_v7 = vadd.f32 %v3977_v33, %v3955_v15 }
 0x2a8   : > { %v3979_v14 = vpop.f32.mrf.mxu1  ;;  %v3958_v51 = vadd.f32 %v3957_v53, %v3956_v1 }
 0x2a9   : > { %v3980_v23 = vadd.f32 %v3979_v14, %v3978_v12 }
 0x2ab   : > { %v3475_v11 = vadd.f32 %v3980_v23, %v3958_v51 }
 0x2c1   : > { %v3997_v26 = vpop.f32.mrf.mxu0 }
 0x2c2   : > { %v4019_v19 = vpop.f32.mrf.mxu1 }
 0x2c3   : > { %v3998_v61 = vpop.f32.mrf.mxu0 }
 0x2c4   : > { %v4020_v50 = vpop.f32.mrf.mxu1  ;;  %v3999_v2 = vadd.f32 %v3998_v61, %v3997_v26 }
 0x2c5   : > { %v4000_v22 = vpop.f32.mrf.mxu0  ;;  %v4021_v49 = vadd.f32 %v4020_v50, %v4019_v19 }
 0x2c6   : > { %v4022_v38 = vpop.f32.mrf.mxu1  ;;  %v3513_v9 = vadd.f32 %v3999_v2, %v3472_v7 }
 0x2c7   : > { %v4001_v10 = vpop.f32.mrf.mxu0 }
 0x2c8   : > { %v4023_v17 = vpop.f32.mrf.mxu1  ;;  %v4002_v28 = vadd.f32 %v4001_v10, %v4000_v22  ;;  %v3554_v58 = vadd.f32 %v4021_v49, %v3513_v9 }
 0x2c9   : > { %v4024_v62 = vadd.f32 %v4023_v17, %v4022_v38 }
 0x2ca   : > { %v3516_v32 = vadd.f32 %v4002_v28, %v3475_v11 }
 0x2cc   : > { %v3557_v16 = vadd.f32 %v4024_v62, %v3516_v32 }
 0x2e2   : > { %v4063_v5 = vpop.f32.mrf.mxu1 }
 0x2e3   : > { %v4041_v52 = vpop.f32.mrf.mxu0 }
 0x2e4   : > { %v4064_v31 = vpop.f32.mrf.mxu1 }
 0x2e5   : > { %v4042_v57 = vpop.f32.mrf.mxu0  ;;  %v4065_v39 = vadd.f32 %v4064_v31, %v4063_v5 }
 0x2e6   : > { %v4043_v59 = vadd.f32 %v4042_v57, %v4041_v52  ;;  %v4066_v41 = vpop.f32.mrf.mxu1 }
 0x2e7   : > { %v4044_v43 = vpop.f32.mrf.mxu0 }
 0x2e8   : > { %v3595_v56 = vadd.f32 %v4043_v59, %v3554_v58  ;;  %v4067_v37 = vpop.f32.mrf.mxu1 }
 0x2e9   : > { %v4045_v8 = vpop.f32.mrf.mxu0  ;;  %v4068_v46 = vadd.f32 %v4067_v37, %v4066_v41 }
 0x2ea   : > { %v4046_v3 = vadd.f32 %v4045_v8, %v4044_v43  ;;  %v3636_v42 = vadd.f32 %v4065_v39, %v3595_v56 }
 0x2ec   : > { %v3598_v44 = vadd.f32 %v4046_v3, %v3557_v16 }
 0x2ee   : > { %v3639_v60 = vadd.f32 %v4068_v46, %v3598_v44 }
 0x304   : > { %v4085_v21 = vpop.f32.mrf.mxu0 }
 0x305   : > { %v4107_v45 = vpop.f32.mrf.mxu1 }
 0x306   : > { %v4086_v27 = vpop.f32.mrf.mxu0 }
 0x307   : > { %v4087_v24 = vadd.f32 %v4086_v27, %v4085_v21  ;;  %v4108_v55 = vpop.f32.mrf.mxu1 }
 0x308   : > { %v4088_v40 = vpop.f32.mrf.mxu0  ;;  %v4109_v30 = vadd.f32 %v4108_v55, %v4107_v45 }
 0x309   : > { %v3677_v48 = vadd.f32 %v4087_v24, %v3636_v42  ;;  %v4110_v63 = vpop.f32.mrf.mxu1 }
 0x30a   : > { %v4089_v4 = vpop.f32.mrf.mxu0 }
 0x30b   : > { %v3718_v29 = vadd.f32 %v4109_v30, %v3677_v48  ;;  %v4090_v13 = vadd.f32 %v4089_v4, %v4088_v40  ;;  %v4111_v6 = vpop.f32.mrf.mxu1 }
 0x30c   : > { %v4112_v18 = vadd.f32 %v4111_v6, %v4110_v63 }
 0x30d   : > { %3724 = vst [vmem:[%s253_s7] sm:$0xff] %v3718_v29  ;;  %v3680_v36 = vadd.f32 %v4090_v13, %v3639_v60 }
 0x30f   : > { %v3721_v0 = vadd.f32 %v4112_v18, %v3680_v36 }
 0x311   : > { %3725 = vst [vmem:[%s253_s7 + $0x8] sm:$0xff] %v3721_v0 }
 0x312 PF: > { %s16_s21 = sadd.s32 1, %s4282_s21  }
 0x313   : > { %p13_p5 = scmp.ge.s32.totalorder %s16_s21, 4  }
 0x315   :  { %15 = sbr.rel (!%p13_p5) target bundleno = 1 (0x1), region = 74 }

</bundles_post_ra>
